<compile_context>
chip_gen: v7x
topology: tpu7x:2x2x1
jax: 0.10.0
libtpu: 0.0.40
codegen_flags: <defaults>
</compile_context>

<pallas_src>
import math

import jax
import jax.numpy as jnp
from jax.experimental import pallas as pl
from jax.experimental.pallas import tpu as pltpu

# ---------------- config (small synthetic sizes) ----------------
B, S = 2, 8            # batch, sequence length
E = 32                 # config.embedding_dim (BERT hidden size)
H = 4                  # attention heads
DH = E // H            # per-head dim
FFN = 64               # BERT intermediate size
HID = 32               # config.hidden_dim  (heads use hidden_dim // 2 = 16)
HID2 = HID // 2
NUM_ACT = 8            # config.num_activities
NUM_OUT = 4            # config.num_outcomes
NUM_LAYERS = 2         # mini-BERT depth
VOCAB = 100
MAX_POS = 16
LN_EPS = 1e-12
PAD = 128              # lane-dense padding for the two output stores
SCALE = 1.0 / math.sqrt(DH)


# ---------------- fused Pallas kernel ----------------
def _fused_kernel(
    emb_ref, bias_ref, maskcol_ref, invlen_ref, emb_g_ref, emb_b_ref,
    wqkv_ref, bqkv_ref, wo_ref, bo_ref, ln1g_ref, ln1b_ref,
    wi_ref, bi_ref, wf_ref, bf_ref, ln2g_ref, ln2b_ref,
    na_w1_ref, na_b1_ref, na_w2_ref, na_b2_ref,
    sh_w_ref, sh_b_ref, oc_w1_ref, oc_b1_ref, oc_w2_ref, oc_b2_ref,
    na_out_ref, oc_out_ref,
):
    f32 = jnp.float32

    def matmul(a, w):
        return jnp.dot(a, w, preferred_element_type=f32)

    def layernorm(h, g, b):
        mu = jnp.mean(h, axis=-1, keepdims=True)
        var = jnp.mean((h - mu) ** 2, axis=-1, keepdims=True)
        return (h - mu) * jax.lax.rsqrt(var + LN_EPS) * g + b

    def gelu(y):
        # tanh-approx GELU.  TODO(synk): HF BERT default is exact erf-GELU.
        return 0.5 * y * (1.0 + jnp.tanh(0.7978845608028654 * (y + 0.044715 * y * y * y)))

    bias = bias_ref[...]                                               # [B*S, B*S] additive

    # --- BERT embeddings LayerNorm ---
    x = layernorm(emb_ref[...], emb_g_ref[...], emb_b_ref[...])        # [B*S, E]

    # --- encoder layers (static unroll; stacked weights indexed by layer) ---
    for l in range(NUM_LAYERS):
        qkv = matmul(x, wqkv_ref[l]) + bqkv_ref[l]                     # [B*S, 3E]

        # split heads once per layer, batch attention over H (B handled by flat bias)
        qh = jnp.stack([qkv[:, h * DH:(h + 1) * DH] for h in range(H)])            # [H,BS,DH]
        kh = jnp.stack([qkv[:, E + h * DH:E + (h + 1) * DH] for h in range(H)])    # [H,BS,DH]
        vh = jnp.stack([qkv[:, 2 * E + h * DH:2 * E + (h + 1) * DH] for h in range(H)])

        s = jax.lax.dot_general(qh, kh, (((2,), (2,)), ((0,), (0,))),
                                preferred_element_type=f32) * SCALE    # [H, BS, BS]
        s = s + bias                                                   # pad + cross-batch mask
        s = s - jnp.max(s, axis=-1, keepdims=True)
        p = jnp.exp(s)
        p = p / jnp.sum(p, axis=-1, keepdims=True)                     # exact softmax
        ctx = jax.lax.dot_general(p, vh, (((2,), (1,)), ((0,), (0,))),
                                  preferred_element_type=f32)          # [H, BS, DH]

        ctx_cat = jnp.concatenate([ctx[h] for h in range(H)], axis=-1)  # [BS, E]
        attn = matmul(ctx_cat, wo_ref[l]) + bo_ref[l]                   # single [E,E] proj

        h1 = layernorm(attn + x, ln1g_ref[l], ln1b_ref[l])
        ff = gelu(matmul(h1, wi_ref[l]) + bi_ref[l])                    # [BS, FFN]
        ff = matmul(ff, wf_ref[l]) + bf_ref[l]                          # [BS, E]
        x = layernorm(ff + h1, ln2g_ref[l], ln2b_ref[l])

    # --- next_activity_head (per token; dropout = identity) ---
    na_h = jnp.maximum(matmul(x, na_w1_ref[...]) + na_b1_ref[...], 0.0)      # [BS, HID2]
    na_out_ref[...] = matmul(na_h, na_w2_ref[...]) + na_b2_ref[...]          # [BS, PAD]

    # --- masked mean pooling + shared_hidden + outcome_head (batched over B) ---
    xm = x * maskcol_ref[...]                                          # [BS, E]
    summed = jnp.sum(xm.reshape(B, S, E), axis=1)                      # [B, E]
    pooled = summed * invlen_ref[...]                                  # [B, E]
    pooled = jnp.maximum(matmul(pooled, sh_w_ref[...]) + sh_b_ref[...], 0.0)
    oc_h = jnp.maximum(matmul(pooled, oc_w1_ref[...]) + oc_b1_ref[...], 0.0)  # [B, HID2]
    oc_out_ref[...] = matmul(oc_h, oc_w2_ref[...]) + oc_b2_ref[...]           # [B, PAD]


# ---------------- parameter init (deterministic) ----------------
def init_params(key):
    def dense(k, din, dout):
        return (0.02 * jax.random.normal(k, (din, dout), jnp.float32),
                jnp.zeros((1, dout), jnp.float32))

    keys = jax.random.split(key, 16)
    p = {}
    p["word_emb"] = 0.02 * jax.random.normal(keys[0], (VOCAB, E), jnp.float32)
    p["pos_emb"] = 0.02 * jax.random.normal(keys[1], (MAX_POS, E), jnp.float32)
    p["type_emb"] = 0.02 * jax.random.normal(keys[2], (2, E), jnp.float32)
    p["emb_ln_g"] = jnp.ones((1, E), jnp.float32)
    p["emb_ln_b"] = jnp.zeros((1, E), jnp.float32)

    wqkv, bqkv, wo, bo, wi, bi, wf, bf = [], [], [], [], [], [], [], []
    for l in range(NUM_LAYERS):
        lk = jax.random.split(keys[3 + l], 6)
        wq, _ = dense(lk[0], E, E)
        wk, _ = dense(lk[1], E, E)
        wv, _ = dense(lk[2], E, E)
        wqkv.append(jnp.concatenate([wq, wk, wv], axis=1))             # fused QKV [E, 3E]
        bqkv.append(jnp.zeros((1, 3 * E), jnp.float32))
        w, b = dense(lk[3], E, E); wo.append(w); bo.append(b)
        w, b = dense(lk[4], E, FFN); wi.append(w); bi.append(b)
        w, b = dense(lk[5], FFN, E); wf.append(w); bf.append(b)
    p["wqkv"] = jnp.stack(wqkv); p["bqkv"] = jnp.stack(bqkv)
    p["wo"] = jnp.stack(wo); p["bo"] = jnp.stack(bo)
    p["wi"] = jnp.stack(wi); p["bi"] = jnp.stack(bi)
    p["wf"] = jnp.stack(wf); p["bf"] = jnp.stack(bf)
    p["ln1_g"] = jnp.ones((NUM_LAYERS, 1, E), jnp.float32)
    p["ln1_b"] = jnp.zeros((NUM_LAYERS, 1, E), jnp.float32)
    p["ln2_g"] = jnp.ones((NUM_LAYERS, 1, E), jnp.float32)
    p["ln2_b"] = jnp.zeros((NUM_LAYERS, 1, E), jnp.float32)

    base = 3 + NUM_LAYERS
    p["sh_w"], p["sh_b"] = dense(keys[base + 0], E, E)                 # shared_hidden
    p["na_w1"], p["na_b1"] = dense(keys[base + 1], E, HID2)            # next_activity_head
    na_w2, na_b2 = dense(keys[base + 2], HID2, NUM_ACT)
    p["oc_w1"], p["oc_b1"] = dense(keys[base + 3], E, HID2)            # outcome_head
    oc_w2, oc_b2 = dense(keys[base + 4], HID2, NUM_OUT)
    # lane-pad classifier outputs to 128 so the kernel's HBM stores are lane-dense
    p["na_w2p"] = jnp.zeros((HID2, PAD), jnp.float32).at[:, :NUM_ACT].set(na_w2)
    p["na_b2p"] = jnp.zeros((1, PAD), jnp.float32).at[:, :NUM_ACT].set(na_b2)
    p["oc_w2p"] = jnp.zeros((HID2, PAD), jnp.float32).at[:, :NUM_OUT].set(oc_w2)
    p["oc_b2p"] = jnp.zeros((1, PAD), jnp.float32).at[:, :NUM_OUT].set(oc_b2)
    return p


# ---------------- forward pass (one fused pallas_call) ----------------
def multitask_bert_forward(params, input_ids, attention_mask):
    mask_f = attention_mask.astype(jnp.float32)                        # [B, S]

    # BERT embedding lookup is XLA glue; everything else runs in the fused kernel.
    we = jnp.take(params["word_emb"], input_ids, axis=0)               # [B, S, E]
    pe = params["pos_emb"][:S][None, :, :]
    te = params["type_emb"][0][None, None, :]                          # token_type_ids = 0
    emb = (we + pe + te).reshape(B * S, E)

    # Hoisted mask plumbing (tiny, computed once outside the kernel):
    #  - additive attention bias: 0 for valid in-batch keys, -1e4 for padded in-batch keys,
    #    ~-1e9 for cross-batch pairs (block-diagonal) -> exp underflows to exactly 0.
    key_bias = ((mask_f - 1.0) * 10000.0).reshape(1, B * S)            # [1, B*S]
    same_batch = jnp.repeat(jnp.repeat(jnp.eye(B, dtype=jnp.float32), S, axis=0), S, axis=1)
    attn_bias = key_bias + (1.0 - same_batch) * (-1e9)                 # [B*S, B*S]
    #  - pooling mask column + 1/length reciprocal (clamp matches torch.clamp(min=1e-9))
    mask_col = mask_f.reshape(B * S, 1)                                # [B*S, 1]
    inv_len = 1.0 / jnp.maximum(jnp.sum(mask_f, axis=-1, keepdims=True), 1e-9)  # [B, 1]

    vmem = pl.BlockSpec(memory_space=pltpu.MemorySpace.VMEM)
    na_pad, oc_pad = pl.pallas_call(
        _fused_kernel,
        out_shape=(
            jax.ShapeDtypeStruct((B * S, PAD), jnp.float32),
            jax.ShapeDtypeStruct((B, PAD), jnp.float32),
        ),
        in_specs=[vmem] * 28,
        out_specs=(vmem, vmem),
    )(
        emb, attn_bias, mask_col, inv_len, params["emb_ln_g"], params["emb_ln_b"],
        params["wqkv"], params["bqkv"], params["wo"], params["bo"],
        params["ln1_g"], params["ln1_b"],
        params["wi"], params["bi"], params["wf"], params["bf"],
        params["ln2_g"], params["ln2_b"],
        params["na_w1"], params["na_b1"], params["na_w2p"], params["na_b2p"],
        params["sh_w"], params["sh_b"],
        params["oc_w1"], params["oc_b1"], params["oc_w2p"], params["oc_b2p"],
    )

    next_activity_logits = na_pad[:, :NUM_ACT].reshape(B, S, NUM_ACT)
    outcome_logits = oc_pad[:, :NUM_OUT]
    return next_activity_logits, outcome_logits


# ---------------- main ----------------
if __name__ == "__main__":
    key = jax.random.PRNGKey(0)
    pkey, ikey = jax.random.split(key)
    params = init_params(pkey)

    input_ids = jax.random.randint(ikey, (B, S), 0, VOCAB, dtype=jnp.int32)
    attention_mask = jnp.array(
        [[1, 1, 1, 1, 1, 1, 1, 1],
         [1, 1, 1, 1, 1, 1, 0, 0]], dtype=jnp.int32)

    fwd = jax.jit(multitask_bert_forward)
    na_logits, oc_logits = fwd(params, input_ids, attention_mask)
    jax.block_until_ready((na_logits, oc_logits))

    assert na_logits.shape == (B, S, NUM_ACT)
    assert oc_logits.shape == (B, NUM_OUT)
    assert jnp.all(jnp.isfinite(na_logits)) and jnp.all(jnp.isfinite(oc_logits))
    print("KERNEL_OK")
</pallas_src>

<mosaic_0001>
module attributes {stable_mosaic.version = 11 : i64} {
  func.func @_fused_kernel(%arg0: memref<16x32xf32, #tpu.memory_space<vmem>>, %arg1: memref<16x16xf32, #tpu.memory_space<vmem>>, %arg2: memref<16x1xf32, #tpu.memory_space<vmem>>, %arg3: memref<2x1xf32, #tpu.memory_space<vmem>>, %arg4: memref<1x32xf32, #tpu.memory_space<vmem>>, %arg5: memref<1x32xf32, #tpu.memory_space<vmem>>, %arg6: memref<2x32x96xf32, #tpu.memory_space<vmem>>, %arg7: memref<2x1x96xf32, #tpu.memory_space<vmem>>, %arg8: memref<2x32x32xf32, #tpu.memory_space<vmem>>, %arg9: memref<2x1x32xf32, #tpu.memory_space<vmem>>, %arg10: memref<2x1x32xf32, #tpu.memory_space<vmem>>, %arg11: memref<2x1x32xf32, #tpu.memory_space<vmem>>, %arg12: memref<2x32x64xf32, #tpu.memory_space<vmem>>, %arg13: memref<2x1x64xf32, #tpu.memory_space<vmem>>, %arg14: memref<2x64x32xf32, #tpu.memory_space<vmem>>, %arg15: memref<2x1x32xf32, #tpu.memory_space<vmem>>, %arg16: memref<2x1x32xf32, #tpu.memory_space<vmem>>, %arg17: memref<2x1x32xf32, #tpu.memory_space<vmem>>, %arg18: memref<32x16xf32, #tpu.memory_space<vmem>>, %arg19: memref<1x16xf32, #tpu.memory_space<vmem>>, %arg20: memref<16x128xf32, #tpu.memory_space<vmem>>, %arg21: memref<1x128xf32, #tpu.memory_space<vmem>>, %arg22: memref<32x32xf32, #tpu.memory_space<vmem>>, %arg23: memref<1x32xf32, #tpu.memory_space<vmem>>, %arg24: memref<32x16xf32, #tpu.memory_space<vmem>>, %arg25: memref<1x16xf32, #tpu.memory_space<vmem>>, %arg26: memref<16x128xf32, #tpu.memory_space<vmem>>, %arg27: memref<1x128xf32, #tpu.memory_space<vmem>>, %arg28: memref<16x128xf32, #tpu.memory_space<vmem>>, %arg29: memref<2x128xf32, #tpu.memory_space<vmem>>) attributes {dimension_semantics = [], scalar_prefetch = 0 : i64, scratch_operands = 0 : i64, tpu.core_type = #tpu.core_type<tc>} {
    %c0 = arith.constant 0 : index
    %c0_0 = arith.constant 0 : index
    %0 = vector.load %arg1[%c0, %c0_0] : memref<16x16xf32, #tpu.memory_space<vmem>>, vector<16x16xf32>
    %c0_1 = arith.constant 0 : index
    %c0_2 = arith.constant 0 : index
    %1 = vector.load %arg0[%c0_1, %c0_2] : memref<16x32xf32, #tpu.memory_space<vmem>>, vector<16x32xf32>
    %c0_3 = arith.constant 0 : index
    %c0_4 = arith.constant 0 : index
    %2 = vector.load %arg4[%c0_3, %c0_4] : memref<1x32xf32, #tpu.memory_space<vmem>>, vector<1x32xf32>
    %c0_5 = arith.constant 0 : index
    %c0_6 = arith.constant 0 : index
    %3 = vector.load %arg5[%c0_5, %c0_6] : memref<1x32xf32, #tpu.memory_space<vmem>>, vector<1x32xf32>
    %cst = arith.constant dense<0.000000e+00> : vector<16xf32>
    %4 = vector.multi_reduction <add>, %1, %cst [1] : vector<16x32xf32> to vector<16xf32>
    %5 = vector.shape_cast %4 : vector<16xf32> to vector<16x1xf32>
    %cst_7 = arith.constant 3.200000e+01 : f32
    %6 = vector.broadcast %cst_7 : f32 to vector<16x1xf32>
    %7 = arith.divf %5, %6 : vector<16x1xf32>
    %8 = vector.broadcast %7 : vector<16x1xf32> to vector<16x32xf32>
    %9 = arith.subf %1, %8 : vector<16x32xf32>
    %10 = arith.mulf %9, %9 : vector<16x32xf32>
    %cst_8 = arith.constant dense<0.000000e+00> : vector<16xf32>
    %11 = vector.multi_reduction <add>, %10, %cst_8 [1] : vector<16x32xf32> to vector<16xf32>
    %12 = vector.shape_cast %11 : vector<16xf32> to vector<16x1xf32>
    %cst_9 = arith.constant 3.200000e+01 : f32
    %13 = vector.broadcast %cst_9 : f32 to vector<16x1xf32>
    %14 = arith.divf %12, %13 : vector<16x1xf32>
    %15 = vector.broadcast %7 : vector<16x1xf32> to vector<16x32xf32>
    %16 = arith.subf %1, %15 : vector<16x32xf32>
    %cst_10 = arith.constant 9.99999996E-13 : f32
    %17 = vector.broadcast %cst_10 : f32 to vector<16x1xf32>
    %18 = arith.addf %14, %17 : vector<16x1xf32>
    %19 = math.rsqrt %18 : vector<16x1xf32>
    %20 = vector.broadcast %19 : vector<16x1xf32> to vector<16x32xf32>
    %21 = arith.mulf %16, %20 : vector<16x32xf32>
    %22 = vector.broadcast %2 : vector<1x32xf32> to vector<16x32xf32>
    %23 = arith.mulf %21, %22 : vector<16x32xf32>
    %24 = vector.broadcast %3 : vector<1x32xf32> to vector<16x32xf32>
    %25 = arith.addf %23, %24 : vector<16x32xf32>
    %c0_11 = arith.constant 0 : index
    %c0_12 = arith.constant 0 : index
    %c0_13 = arith.constant 0 : index
    %26 = vector.load %arg6[%c0_11, %c0_12, %c0_13] : memref<2x32x96xf32, #tpu.memory_space<vmem>>, vector<1x32x96xf32>
    %27 = vector.shape_cast %26 : vector<1x32x96xf32> to vector<32x96xf32>
    %cst_14 = arith.constant dense<0.000000e+00> : vector<16x96xf32>
    %28 = tpu.matmul %25, %27, %cst_14 {dimension_numbers = #tpu.dot_dimension_numbers<[1], [0], [0], [1], [0, 0, 1, 1], [], []>} : vector<16x32xf32>, vector<32x96xf32>, vector<16x96xf32> -> vector<16x96xf32>
    %c0_15 = arith.constant 0 : index
    %c0_16 = arith.constant 0 : index
    %c0_17 = arith.constant 0 : index
    %29 = vector.load %arg7[%c0_15, %c0_16, %c0_17] : memref<2x1x96xf32, #tpu.memory_space<vmem>>, vector<1x1x96xf32>
    %30 = vector.shape_cast %29 : vector<1x1x96xf32> to vector<1x96xf32>
    %31 = vector.broadcast %30 : vector<1x96xf32> to vector<16x96xf32>
    %32 = arith.addf %28, %31 : vector<16x96xf32>
    %33 = vector.extract_strided_slice %32 {offsets = [0, 0], sizes = [16, 8], strides = [1, 1]} : vector<16x96xf32> to vector<16x8xf32>
    %34 = vector.extract_strided_slice %32 {offsets = [0, 8], sizes = [16, 8], strides = [1, 1]} : vector<16x96xf32> to vector<16x8xf32>
    %35 = vector.extract_strided_slice %32 {offsets = [0, 16], sizes = [16, 8], strides = [1, 1]} : vector<16x96xf32> to vector<16x8xf32>
    %36 = vector.extract_strided_slice %32 {offsets = [0, 24], sizes = [16, 8], strides = [1, 1]} : vector<16x96xf32> to vector<16x8xf32>
    %37 = vector.shape_cast %33 : vector<16x8xf32> to vector<1x16x8xf32>
    %38 = vector.shape_cast %34 : vector<16x8xf32> to vector<1x16x8xf32>
    %39 = vector.shape_cast %35 : vector<16x8xf32> to vector<1x16x8xf32>
    %40 = vector.shape_cast %36 : vector<16x8xf32> to vector<1x16x8xf32>
    %41 = tpu.concatenate %37, %38, %39, %40 in 0 : vector<1x16x8xf32>, vector<1x16x8xf32>, vector<1x16x8xf32>, vector<1x16x8xf32> -> vector<4x16x8xf32>
    %42 = vector.extract_strided_slice %32 {offsets = [0, 32], sizes = [16, 8], strides = [1, 1]} : vector<16x96xf32> to vector<16x8xf32>
    %43 = vector.extract_strided_slice %32 {offsets = [0, 40], sizes = [16, 8], strides = [1, 1]} : vector<16x96xf32> to vector<16x8xf32>
    %44 = vector.extract_strided_slice %32 {offsets = [0, 48], sizes = [16, 8], strides = [1, 1]} : vector<16x96xf32> to vector<16x8xf32>
    %45 = vector.extract_strided_slice %32 {offsets = [0, 56], sizes = [16, 8], strides = [1, 1]} : vector<16x96xf32> to vector<16x8xf32>
    %46 = vector.shape_cast %42 : vector<16x8xf32> to vector<1x16x8xf32>
    %47 = vector.shape_cast %43 : vector<16x8xf32> to vector<1x16x8xf32>
    %48 = vector.shape_cast %44 : vector<16x8xf32> to vector<1x16x8xf32>
    %49 = vector.shape_cast %45 : vector<16x8xf32> to vector<1x16x8xf32>
    %50 = tpu.concatenate %46, %47, %48, %49 in 0 : vector<1x16x8xf32>, vector<1x16x8xf32>, vector<1x16x8xf32>, vector<1x16x8xf32> -> vector<4x16x8xf32>
    %51 = vector.extract_strided_slice %32 {offsets = [0, 64], sizes = [16, 8], strides = [1, 1]} : vector<16x96xf32> to vector<16x8xf32>
    %52 = vector.extract_strided_slice %32 {offsets = [0, 72], sizes = [16, 8], strides = [1, 1]} : vector<16x96xf32> to vector<16x8xf32>
    %53 = vector.extract_strided_slice %32 {offsets = [0, 80], sizes = [16, 8], strides = [1, 1]} : vector<16x96xf32> to vector<16x8xf32>
    %54 = vector.extract_strided_slice %32 {offsets = [0, 88], sizes = [16, 8], strides = [1, 1]} : vector<16x96xf32> to vector<16x8xf32>
    %55 = vector.shape_cast %51 : vector<16x8xf32> to vector<1x16x8xf32>
    %56 = vector.shape_cast %52 : vector<16x8xf32> to vector<1x16x8xf32>
    %57 = vector.shape_cast %53 : vector<16x8xf32> to vector<1x16x8xf32>
    %58 = vector.shape_cast %54 : vector<16x8xf32> to vector<1x16x8xf32>
    %59 = tpu.concatenate %55, %56, %57, %58 in 0 : vector<1x16x8xf32>, vector<1x16x8xf32>, vector<1x16x8xf32>, vector<1x16x8xf32> -> vector<4x16x8xf32>
    %cst_18 = arith.constant dense<0.000000e+00> : vector<4x16x16xf32>
    %60 = tpu.matmul %41, %50, %cst_18 {dimension_numbers = #tpu.dot_dimension_numbers<[2], [2], [1], [1], [0, 0, 0, 1, 1, 1], [0], [0]>} : vector<4x16x8xf32>, vector<4x16x8xf32>, vector<4x16x16xf32> -> vector<4x16x16xf32>
    %cst_19 = arith.constant 0.353553385 : f32
    %61 = vector.broadcast %cst_19 : f32 to vector<4x16x16xf32>
    %62 = arith.mulf %60, %61 : vector<4x16x16xf32>
    %63 = vector.shape_cast %0 : vector<16x16xf32> to vector<1x16x16xf32>
    %64 = vector.broadcast %63 : vector<1x16x16xf32> to vector<4x16x16xf32>
    %65 = arith.addf %62, %64 : vector<4x16x16xf32>
    %cst_20 = arith.constant dense<0xFF800000> : vector<4x16xf32>
    %66 = vector.multi_reduction <maximumf>, %65, %cst_20 [2] : vector<4x16x16xf32> to vector<4x16xf32>
    %67 = vector.shape_cast %66 : vector<4x16xf32> to vector<4x16x1xf32>
    %68 = vector.broadcast %67 : vector<4x16x1xf32> to vector<4x16x16xf32>
    %69 = arith.subf %65, %68 : vector<4x16x16xf32>
    %70 = math.exp %69 : vector<4x16x16xf32>
    %cst_21 = arith.constant dense<0.000000e+00> : vector<4x16xf32>
    %71 = vector.multi_reduction <add>, %70, %cst_21 [2] : vector<4x16x16xf32> to vector<4x16xf32>
    %72 = vector.shape_cast %71 : vector<4x16xf32> to vector<4x16x1xf32>
    %73 = vector.broadcast %72 : vector<4x16x1xf32> to vector<4x16x16xf32>
    %74 = arith.divf %70, %73 : vector<4x16x16xf32>
    %cst_22 = arith.constant dense<0.000000e+00> : vector<4x16x8xf32>
    %75 = tpu.matmul %74, %59, %cst_22 {dimension_numbers = #tpu.dot_dimension_numbers<[2], [1], [1], [2], [0, 0, 0, 1, 1, 2], [0], [0]>} : vector<4x16x16xf32>, vector<4x16x8xf32>, vector<4x16x8xf32> -> vector<4x16x8xf32>
    %76 = vector.extract_strided_slice %75 {offsets = [0, 0, 0], sizes = [1, 16, 8], strides = [1, 1, 1]} : vector<4x16x8xf32> to vector<1x16x8xf32>
    %77 = vector.shape_cast %76 : vector<1x16x8xf32> to vector<16x8xf32>
    %78 = vector.extract_strided_slice %75 {offsets = [1, 0, 0], sizes = [1, 16, 8], strides = [1, 1, 1]} : vector<4x16x8xf32> to vector<1x16x8xf32>
    %79 = vector.shape_cast %78 : vector<1x16x8xf32> to vector<16x8xf32>
    %80 = vector.extract_strided_slice %75 {offsets = [2, 0, 0], sizes = [1, 16, 8], strides = [1, 1, 1]} : vector<4x16x8xf32> to vector<1x16x8xf32>
    %81 = vector.shape_cast %80 : vector<1x16x8xf32> to vector<16x8xf32>
    %82 = vector.extract_strided_slice %75 {offsets = [3, 0, 0], sizes = [1, 16, 8], strides = [1, 1, 1]} : vector<4x16x8xf32> to vector<1x16x8xf32>
    %83 = vector.shape_cast %82 : vector<1x16x8xf32> to vector<16x8xf32>
    %84 = tpu.concatenate %77, %79, %81, %83 in 1 : vector<16x8xf32>, vector<16x8xf32>, vector<16x8xf32>, vector<16x8xf32> -> vector<16x32xf32>
    %c0_23 = arith.constant 0 : index
    %c0_24 = arith.constant 0 : index
    %c0_25 = arith.constant 0 : index
    %85 = vector.load %arg8[%c0_23, %c0_24, %c0_25] : memref<2x32x32xf32, #tpu.memory_space<vmem>>, vector<1x32x32xf32>
    %86 = vector.shape_cast %85 : vector<1x32x32xf32> to vector<32x32xf32>
    %cst_26 = arith.constant dense<0.000000e+00> : vector<16x32xf32>
    %87 = tpu.matmul %84, %86, %cst_26 {dimension_numbers = #tpu.dot_dimension_numbers<[1], [0], [0], [1], [0, 0, 1, 1], [], []>} : vector<16x32xf32>, vector<32x32xf32>, vector<16x32xf32> -> vector<16x32xf32>
    %c0_27 = arith.constant 0 : index
    %c0_28 = arith.constant 0 : index
    %c0_29 = arith.constant 0 : index
    %88 = vector.load %arg9[%c0_27, %c0_28, %c0_29] : memref<2x1x32xf32, #tpu.memory_space<vmem>>, vector<1x1x32xf32>
    %89 = vector.shape_cast %88 : vector<1x1x32xf32> to vector<1x32xf32>
    %90 = vector.broadcast %89 : vector<1x32xf32> to vector<16x32xf32>
    %91 = arith.addf %87, %90 : vector<16x32xf32>
    %92 = arith.addf %91, %25 : vector<16x32xf32>
    %c0_30 = arith.constant 0 : index
    %c0_31 = arith.constant 0 : index
    %c0_32 = arith.constant 0 : index
    %93 = vector.load %arg10[%c0_30, %c0_31, %c0_32] : memref<2x1x32xf32, #tpu.memory_space<vmem>>, vector<1x1x32xf32>
    %94 = vector.shape_cast %93 : vector<1x1x32xf32> to vector<1x32xf32>
    %c0_33 = arith.constant 0 : index
    %c0_34 = arith.constant 0 : index
    %c0_35 = arith.constant 0 : index
    %95 = vector.load %arg11[%c0_33, %c0_34, %c0_35] : memref<2x1x32xf32, #tpu.memory_space<vmem>>, vector<1x1x32xf32>
    %96 = vector.shape_cast %95 : vector<1x1x32xf32> to vector<1x32xf32>
    %cst_36 = arith.constant dense<0.000000e+00> : vector<16xf32>
    %97 = vector.multi_reduction <add>, %92, %cst_36 [1] : vector<16x32xf32> to vector<16xf32>
    %98 = vector.shape_cast %97 : vector<16xf32> to vector<16x1xf32>
    %cst_37 = arith.constant 3.200000e+01 : f32
    %99 = vector.broadcast %cst_37 : f32 to vector<16x1xf32>
    %100 = arith.divf %98, %99 : vector<16x1xf32>
    %101 = vector.broadcast %100 : vector<16x1xf32> to vector<16x32xf32>
    %102 = arith.subf %92, %101 : vector<16x32xf32>
    %103 = arith.mulf %102, %102 : vector<16x32xf32>
    %cst_38 = arith.constant dense<0.000000e+00> : vector<16xf32>
    %104 = vector.multi_reduction <add>, %103, %cst_38 [1] : vector<16x32xf32> to vector<16xf32>
    %105 = vector.shape_cast %104 : vector<16xf32> to vector<16x1xf32>
    %cst_39 = arith.constant 3.200000e+01 : f32
    %106 = vector.broadcast %cst_39 : f32 to vector<16x1xf32>
    %107 = arith.divf %105, %106 : vector<16x1xf32>
    %108 = vector.broadcast %100 : vector<16x1xf32> to vector<16x32xf32>
    %109 = arith.subf %92, %108 : vector<16x32xf32>
    %cst_40 = arith.constant 9.99999996E-13 : f32
    %110 = vector.broadcast %cst_40 : f32 to vector<16x1xf32>
    %111 = arith.addf %107, %110 : vector<16x1xf32>
    %112 = math.rsqrt %111 : vector<16x1xf32>
    %113 = vector.broadcast %112 : vector<16x1xf32> to vector<16x32xf32>
    %114 = arith.mulf %109, %113 : vector<16x32xf32>
    %115 = vector.broadcast %94 : vector<1x32xf32> to vector<16x32xf32>
    %116 = arith.mulf %114, %115 : vector<16x32xf32>
    %117 = vector.broadcast %96 : vector<1x32xf32> to vector<16x32xf32>
    %118 = arith.addf %116, %117 : vector<16x32xf32>
    %c0_41 = arith.constant 0 : index
    %c0_42 = arith.constant 0 : index
    %c0_43 = arith.constant 0 : index
    %119 = vector.load %arg12[%c0_41, %c0_42, %c0_43] : memref<2x32x64xf32, #tpu.memory_space<vmem>>, vector<1x32x64xf32>
    %120 = vector.shape_cast %119 : vector<1x32x64xf32> to vector<32x64xf32>
    %cst_44 = arith.constant dense<0.000000e+00> : vector<16x64xf32>
    %121 = tpu.matmul %118, %120, %cst_44 {dimension_numbers = #tpu.dot_dimension_numbers<[1], [0], [0], [1], [0, 0, 1, 1], [], []>} : vector<16x32xf32>, vector<32x64xf32>, vector<16x64xf32> -> vector<16x64xf32>
    %c0_45 = arith.constant 0 : index
    %c0_46 = arith.constant 0 : index
    %c0_47 = arith.constant 0 : index
    %122 = vector.load %arg13[%c0_45, %c0_46, %c0_47] : memref<2x1x64xf32, #tpu.memory_space<vmem>>, vector<1x1x64xf32>
    %123 = vector.shape_cast %122 : vector<1x1x64xf32> to vector<1x64xf32>
    %124 = vector.broadcast %123 : vector<1x64xf32> to vector<16x64xf32>
    %125 = arith.addf %121, %124 : vector<16x64xf32>
    %cst_48 = arith.constant 5.000000e-01 : f32
    %126 = vector.broadcast %cst_48 : f32 to vector<16x64xf32>
    %127 = arith.mulf %126, %125 : vector<16x64xf32>
    %cst_49 = arith.constant 4.471500e-02 : f32
    %128 = vector.broadcast %cst_49 : f32 to vector<16x64xf32>
    %129 = arith.mulf %128, %125 : vector<16x64xf32>
    %130 = arith.mulf %129, %125 : vector<16x64xf32>
    %131 = arith.mulf %130, %125 : vector<16x64xf32>
    %132 = arith.addf %125, %131 : vector<16x64xf32>
    %cst_50 = arith.constant 0.797884583 : f32
    %133 = vector.broadcast %cst_50 : f32 to vector<16x64xf32>
    %134 = arith.mulf %133, %132 : vector<16x64xf32>
    %135 = math.tanh %134 : vector<16x64xf32>
    %cst_51 = arith.constant 1.000000e+00 : f32
    %136 = vector.broadcast %cst_51 : f32 to vector<16x64xf32>
    %137 = arith.addf %136, %135 : vector<16x64xf32>
    %138 = arith.mulf %127, %137 : vector<16x64xf32>
    %c0_52 = arith.constant 0 : index
    %c0_53 = arith.constant 0 : index
    %c0_54 = arith.constant 0 : index
    %139 = vector.load %arg14[%c0_52, %c0_53, %c0_54] : memref<2x64x32xf32, #tpu.memory_space<vmem>>, vector<1x64x32xf32>
    %140 = vector.shape_cast %139 : vector<1x64x32xf32> to vector<64x32xf32>
    %cst_55 = arith.constant dense<0.000000e+00> : vector<16x32xf32>
    %141 = tpu.matmul %138, %140, %cst_55 {dimension_numbers = #tpu.dot_dimension_numbers<[1], [0], [0], [1], [0, 0, 1, 1], [], []>} : vector<16x64xf32>, vector<64x32xf32>, vector<16x32xf32> -> vector<16x32xf32>
    %c0_56 = arith.constant 0 : index
    %c0_57 = arith.constant 0 : index
    %c0_58 = arith.constant 0 : index
    %142 = vector.load %arg15[%c0_56, %c0_57, %c0_58] : memref<2x1x32xf32, #tpu.memory_space<vmem>>, vector<1x1x32xf32>
    %143 = vector.shape_cast %142 : vector<1x1x32xf32> to vector<1x32xf32>
    %144 = vector.broadcast %143 : vector<1x32xf32> to vector<16x32xf32>
    %145 = arith.addf %141, %144 : vector<16x32xf32>
    %146 = arith.addf %145, %118 : vector<16x32xf32>
    %c0_59 = arith.constant 0 : index
    %c0_60 = arith.constant 0 : index
    %c0_61 = arith.constant 0 : index
    %147 = vector.load %arg16[%c0_59, %c0_60, %c0_61] : memref<2x1x32xf32, #tpu.memory_space<vmem>>, vector<1x1x32xf32>
    %148 = vector.shape_cast %147 : vector<1x1x32xf32> to vector<1x32xf32>
    %c0_62 = arith.constant 0 : index
    %c0_63 = arith.constant 0 : index
    %c0_64 = arith.constant 0 : index
    %149 = vector.load %arg17[%c0_62, %c0_63, %c0_64] : memref<2x1x32xf32, #tpu.memory_space<vmem>>, vector<1x1x32xf32>
    %150 = vector.shape_cast %149 : vector<1x1x32xf32> to vector<1x32xf32>
    %cst_65 = arith.constant dense<0.000000e+00> : vector<16xf32>
    %151 = vector.multi_reduction <add>, %146, %cst_65 [1] : vector<16x32xf32> to vector<16xf32>
    %152 = vector.shape_cast %151 : vector<16xf32> to vector<16x1xf32>
    %cst_66 = arith.constant 3.200000e+01 : f32
    %153 = vector.broadcast %cst_66 : f32 to vector<16x1xf32>
    %154 = arith.divf %152, %153 : vector<16x1xf32>
    %155 = vector.broadcast %154 : vector<16x1xf32> to vector<16x32xf32>
    %156 = arith.subf %146, %155 : vector<16x32xf32>
    %157 = arith.mulf %156, %156 : vector<16x32xf32>
    %cst_67 = arith.constant dense<0.000000e+00> : vector<16xf32>
    %158 = vector.multi_reduction <add>, %157, %cst_67 [1] : vector<16x32xf32> to vector<16xf32>
    %159 = vector.shape_cast %158 : vector<16xf32> to vector<16x1xf32>
    %cst_68 = arith.constant 3.200000e+01 : f32
    %160 = vector.broadcast %cst_68 : f32 to vector<16x1xf32>
    %161 = arith.divf %159, %160 : vector<16x1xf32>
    %162 = vector.broadcast %154 : vector<16x1xf32> to vector<16x32xf32>
    %163 = arith.subf %146, %162 : vector<16x32xf32>
    %cst_69 = arith.constant 9.99999996E-13 : f32
    %164 = vector.broadcast %cst_69 : f32 to vector<16x1xf32>
    %165 = arith.addf %161, %164 : vector<16x1xf32>
    %166 = math.rsqrt %165 : vector<16x1xf32>
    %167 = vector.broadcast %166 : vector<16x1xf32> to vector<16x32xf32>
    %168 = arith.mulf %163, %167 : vector<16x32xf32>
    %169 = vector.broadcast %148 : vector<1x32xf32> to vector<16x32xf32>
    %170 = arith.mulf %168, %169 : vector<16x32xf32>
    %171 = vector.broadcast %150 : vector<1x32xf32> to vector<16x32xf32>
    %172 = arith.addf %170, %171 : vector<16x32xf32>
    %c1 = arith.constant 1 : index
    %c0_70 = arith.constant 0 : index
    %c0_71 = arith.constant 0 : index
    %173 = vector.load %arg6[%c1, %c0_70, %c0_71] : memref<2x32x96xf32, #tpu.memory_space<vmem>>, vector<1x32x96xf32>
    %174 = vector.shape_cast %173 : vector<1x32x96xf32> to vector<32x96xf32>
    %cst_72 = arith.constant dense<0.000000e+00> : vector<16x96xf32>
    %175 = tpu.matmul %172, %174, %cst_72 {dimension_numbers = #tpu.dot_dimension_numbers<[1], [0], [0], [1], [0, 0, 1, 1], [], []>} : vector<16x32xf32>, vector<32x96xf32>, vector<16x96xf32> -> vector<16x96xf32>
    %c1_73 = arith.constant 1 : index
    %c0_74 = arith.constant 0 : index
    %c0_75 = arith.constant 0 : index
    %176 = vector.load %arg7[%c1_73, %c0_74, %c0_75] : memref<2x1x96xf32, #tpu.memory_space<vmem>>, vector<1x1x96xf32>
    %177 = vector.shape_cast %176 : vector<1x1x96xf32> to vector<1x96xf32>
    %178 = vector.broadcast %177 : vector<1x96xf32> to vector<16x96xf32>
    %179 = arith.addf %175, %178 : vector<16x96xf32>
    %180 = vector.extract_strided_slice %179 {offsets = [0, 0], sizes = [16, 8], strides = [1, 1]} : vector<16x96xf32> to vector<16x8xf32>
    %181 = vector.extract_strided_slice %179 {offsets = [0, 8], sizes = [16, 8], strides = [1, 1]} : vector<16x96xf32> to vector<16x8xf32>
    %182 = vector.extract_strided_slice %179 {offsets = [0, 16], sizes = [16, 8], strides = [1, 1]} : vector<16x96xf32> to vector<16x8xf32>
    %183 = vector.extract_strided_slice %179 {offsets = [0, 24], sizes = [16, 8], strides = [1, 1]} : vector<16x96xf32> to vector<16x8xf32>
    %184 = vector.shape_cast %180 : vector<16x8xf32> to vector<1x16x8xf32>
    %185 = vector.shape_cast %181 : vector<16x8xf32> to vector<1x16x8xf32>
    %186 = vector.shape_cast %182 : vector<16x8xf32> to vector<1x16x8xf32>
    %187 = vector.shape_cast %183 : vector<16x8xf32> to vector<1x16x8xf32>
    %188 = tpu.concatenate %184, %185, %186, %187 in 0 : vector<1x16x8xf32>, vector<1x16x8xf32>, vector<1x16x8xf32>, vector<1x16x8xf32> -> vector<4x16x8xf32>
    %189 = vector.extract_strided_slice %179 {offsets = [0, 32], sizes = [16, 8], strides = [1, 1]} : vector<16x96xf32> to vector<16x8xf32>
    %190 = vector.extract_strided_slice %179 {offsets = [0, 40], sizes = [16, 8], strides = [1, 1]} : vector<16x96xf32> to vector<16x8xf32>
    %191 = vector.extract_strided_slice %179 {offsets = [0, 48], sizes = [16, 8], strides = [1, 1]} : vector<16x96xf32> to vector<16x8xf32>
    %192 = vector.extract_strided_slice %179 {offsets = [0, 56], sizes = [16, 8], strides = [1, 1]} : vector<16x96xf32> to vector<16x8xf32>
    %193 = vector.shape_cast %189 : vector<16x8xf32> to vector<1x16x8xf32>
    %194 = vector.shape_cast %190 : vector<16x8xf32> to vector<1x16x8xf32>
    %195 = vector.shape_cast %191 : vector<16x8xf32> to vector<1x16x8xf32>
    %196 = vector.shape_cast %192 : vector<16x8xf32> to vector<1x16x8xf32>
    %197 = tpu.concatenate %193, %194, %195, %196 in 0 : vector<1x16x8xf32>, vector<1x16x8xf32>, vector<1x16x8xf32>, vector<1x16x8xf32> -> vector<4x16x8xf32>
    %198 = vector.extract_strided_slice %179 {offsets = [0, 64], sizes = [16, 8], strides = [1, 1]} : vector<16x96xf32> to vector<16x8xf32>
    %199 = vector.extract_strided_slice %179 {offsets = [0, 72], sizes = [16, 8], strides = [1, 1]} : vector<16x96xf32> to vector<16x8xf32>
    %200 = vector.extract_strided_slice %179 {offsets = [0, 80], sizes = [16, 8], strides = [1, 1]} : vector<16x96xf32> to vector<16x8xf32>
    %201 = vector.extract_strided_slice %179 {offsets = [0, 88], sizes = [16, 8], strides = [1, 1]} : vector<16x96xf32> to vector<16x8xf32>
    %202 = vector.shape_cast %198 : vector<16x8xf32> to vector<1x16x8xf32>
    %203 = vector.shape_cast %199 : vector<16x8xf32> to vector<1x16x8xf32>
    %204 = vector.shape_cast %200 : vector<16x8xf32> to vector<1x16x8xf32>
    %205 = vector.shape_cast %201 : vector<16x8xf32> to vector<1x16x8xf32>
    %206 = tpu.concatenate %202, %203, %204, %205 in 0 : vector<1x16x8xf32>, vector<1x16x8xf32>, vector<1x16x8xf32>, vector<1x16x8xf32> -> vector<4x16x8xf32>
    %cst_76 = arith.constant dense<0.000000e+00> : vector<4x16x16xf32>
    %207 = tpu.matmul %188, %197, %cst_76 {dimension_numbers = #tpu.dot_dimension_numbers<[2], [2], [1], [1], [0, 0, 0, 1, 1, 1], [0], [0]>} : vector<4x16x8xf32>, vector<4x16x8xf32>, vector<4x16x16xf32> -> vector<4x16x16xf32>
    %cst_77 = arith.constant 0.353553385 : f32
    %208 = vector.broadcast %cst_77 : f32 to vector<4x16x16xf32>
    %209 = arith.mulf %207, %208 : vector<4x16x16xf32>
    %210 = vector.shape_cast %0 : vector<16x16xf32> to vector<1x16x16xf32>
    %211 = vector.broadcast %210 : vector<1x16x16xf32> to vector<4x16x16xf32>
    %212 = arith.addf %209, %211 : vector<4x16x16xf32>
    %cst_78 = arith.constant dense<0xFF800000> : vector<4x16xf32>
    %213 = vector.multi_reduction <maximumf>, %212, %cst_78 [2] : vector<4x16x16xf32> to vector<4x16xf32>
    %214 = vector.shape_cast %213 : vector<4x16xf32> to vector<4x16x1xf32>
    %215 = vector.broadcast %214 : vector<4x16x1xf32> to vector<4x16x16xf32>
    %216 = arith.subf %212, %215 : vector<4x16x16xf32>
    %217 = math.exp %216 : vector<4x16x16xf32>
    %cst_79 = arith.constant dense<0.000000e+00> : vector<4x16xf32>
    %218 = vector.multi_reduction <add>, %217, %cst_79 [2] : vector<4x16x16xf32> to vector<4x16xf32>
    %219 = vector.shape_cast %218 : vector<4x16xf32> to vector<4x16x1xf32>
    %220 = vector.broadcast %219 : vector<4x16x1xf32> to vector<4x16x16xf32>
    %221 = arith.divf %217, %220 : vector<4x16x16xf32>
    %cst_80 = arith.constant dense<0.000000e+00> : vector<4x16x8xf32>
    %222 = tpu.matmul %221, %206, %cst_80 {dimension_numbers = #tpu.dot_dimension_numbers<[2], [1], [1], [2], [0, 0, 0, 1, 1, 2], [0], [0]>} : vector<4x16x16xf32>, vector<4x16x8xf32>, vector<4x16x8xf32> -> vector<4x16x8xf32>
    %223 = vector.extract_strided_slice %222 {offsets = [0, 0, 0], sizes = [1, 16, 8], strides = [1, 1, 1]} : vector<4x16x8xf32> to vector<1x16x8xf32>
    %224 = vector.shape_cast %223 : vector<1x16x8xf32> to vector<16x8xf32>
    %225 = vector.extract_strided_slice %222 {offsets = [1, 0, 0], sizes = [1, 16, 8], strides = [1, 1, 1]} : vector<4x16x8xf32> to vector<1x16x8xf32>
    %226 = vector.shape_cast %225 : vector<1x16x8xf32> to vector<16x8xf32>
    %227 = vector.extract_strided_slice %222 {offsets = [2, 0, 0], sizes = [1, 16, 8], strides = [1, 1, 1]} : vector<4x16x8xf32> to vector<1x16x8xf32>
    %228 = vector.shape_cast %227 : vector<1x16x8xf32> to vector<16x8xf32>
    %229 = vector.extract_strided_slice %222 {offsets = [3, 0, 0], sizes = [1, 16, 8], strides = [1, 1, 1]} : vector<4x16x8xf32> to vector<1x16x8xf32>
    %230 = vector.shape_cast %229 : vector<1x16x8xf32> to vector<16x8xf32>
    %231 = tpu.concatenate %224, %226, %228, %230 in 1 : vector<16x8xf32>, vector<16x8xf32>, vector<16x8xf32>, vector<16x8xf32> -> vector<16x32xf32>
    %c1_81 = arith.constant 1 : index
    %c0_82 = arith.constant 0 : index
    %c0_83 = arith.constant 0 : index
    %232 = vector.load %arg8[%c1_81, %c0_82, %c0_83] : memref<2x32x32xf32, #tpu.memory_space<vmem>>, vector<1x32x32xf32>
    %233 = vector.shape_cast %232 : vector<1x32x32xf32> to vector<32x32xf32>
    %cst_84 = arith.constant dense<0.000000e+00> : vector<16x32xf32>
    %234 = tpu.matmul %231, %233, %cst_84 {dimension_numbers = #tpu.dot_dimension_numbers<[1], [0], [0], [1], [0, 0, 1, 1], [], []>} : vector<16x32xf32>, vector<32x32xf32>, vector<16x32xf32> -> vector<16x32xf32>
    %c1_85 = arith.constant 1 : index
    %c0_86 = arith.constant 0 : index
    %c0_87 = arith.constant 0 : index
    %235 = vector.load %arg9[%c1_85, %c0_86, %c0_87] : memref<2x1x32xf32, #tpu.memory_space<vmem>>, vector<1x1x32xf32>
    %236 = vector.shape_cast %235 : vector<1x1x32xf32> to vector<1x32xf32>
    %237 = vector.broadcast %236 : vector<1x32xf32> to vector<16x32xf32>
    %238 = arith.addf %234, %237 : vector<16x32xf32>
    %239 = arith.addf %238, %172 : vector<16x32xf32>
    %c1_88 = arith.constant 1 : index
    %c0_89 = arith.constant 0 : index
    %c0_90 = arith.constant 0 : index
    %240 = vector.load %arg10[%c1_88, %c0_89, %c0_90] : memref<2x1x32xf32, #tpu.memory_space<vmem>>, vector<1x1x32xf32>
    %241 = vector.shape_cast %240 : vector<1x1x32xf32> to vector<1x32xf32>
    %c1_91 = arith.constant 1 : index
    %c0_92 = arith.constant 0 : index
    %c0_93 = arith.constant 0 : index
    %242 = vector.load %arg11[%c1_91, %c0_92, %c0_93] : memref<2x1x32xf32, #tpu.memory_space<vmem>>, vector<1x1x32xf32>
    %243 = vector.shape_cast %242 : vector<1x1x32xf32> to vector<1x32xf32>
    %cst_94 = arith.constant dense<0.000000e+00> : vector<16xf32>
    %244 = vector.multi_reduction <add>, %239, %cst_94 [1] : vector<16x32xf32> to vector<16xf32>
    %245 = vector.shape_cast %244 : vector<16xf32> to vector<16x1xf32>
    %cst_95 = arith.constant 3.200000e+01 : f32
    %246 = vector.broadcast %cst_95 : f32 to vector<16x1xf32>
    %247 = arith.divf %245, %246 : vector<16x1xf32>
    %248 = vector.broadcast %247 : vector<16x1xf32> to vector<16x32xf32>
    %249 = arith.subf %239, %248 : vector<16x32xf32>
    %250 = arith.mulf %249, %249 : vector<16x32xf32>
    %cst_96 = arith.constant dense<0.000000e+00> : vector<16xf32>
    %251 = vector.multi_reduction <add>, %250, %cst_96 [1] : vector<16x32xf32> to vector<16xf32>
    %252 = vector.shape_cast %251 : vector<16xf32> to vector<16x1xf32>
    %cst_97 = arith.constant 3.200000e+01 : f32
    %253 = vector.broadcast %cst_97 : f32 to vector<16x1xf32>
    %254 = arith.divf %252, %253 : vector<16x1xf32>
    %255 = vector.broadcast %247 : vector<16x1xf32> to vector<16x32xf32>
    %256 = arith.subf %239, %255 : vector<16x32xf32>
    %cst_98 = arith.constant 9.99999996E-13 : f32
    %257 = vector.broadcast %cst_98 : f32 to vector<16x1xf32>
    %258 = arith.addf %254, %257 : vector<16x1xf32>
    %259 = math.rsqrt %258 : vector<16x1xf32>
    %260 = vector.broadcast %259 : vector<16x1xf32> to vector<16x32xf32>
    %261 = arith.mulf %256, %260 : vector<16x32xf32>
    %262 = vector.broadcast %241 : vector<1x32xf32> to vector<16x32xf32>
    %263 = arith.mulf %261, %262 : vector<16x32xf32>
    %264 = vector.broadcast %243 : vector<1x32xf32> to vector<16x32xf32>
    %265 = arith.addf %263, %264 : vector<16x32xf32>
    %c1_99 = arith.constant 1 : index
    %c0_100 = arith.constant 0 : index
    %c0_101 = arith.constant 0 : index
    %266 = vector.load %arg12[%c1_99, %c0_100, %c0_101] : memref<2x32x64xf32, #tpu.memory_space<vmem>>, vector<1x32x64xf32>
    %267 = vector.shape_cast %266 : vector<1x32x64xf32> to vector<32x64xf32>
    %cst_102 = arith.constant dense<0.000000e+00> : vector<16x64xf32>
    %268 = tpu.matmul %265, %267, %cst_102 {dimension_numbers = #tpu.dot_dimension_numbers<[1], [0], [0], [1], [0, 0, 1, 1], [], []>} : vector<16x32xf32>, vector<32x64xf32>, vector<16x64xf32> -> vector<16x64xf32>
    %c1_103 = arith.constant 1 : index
    %c0_104 = arith.constant 0 : index
    %c0_105 = arith.constant 0 : index
    %269 = vector.load %arg13[%c1_103, %c0_104, %c0_105] : memref<2x1x64xf32, #tpu.memory_space<vmem>>, vector<1x1x64xf32>
    %270 = vector.shape_cast %269 : vector<1x1x64xf32> to vector<1x64xf32>
    %271 = vector.broadcast %270 : vector<1x64xf32> to vector<16x64xf32>
    %272 = arith.addf %268, %271 : vector<16x64xf32>
    %cst_106 = arith.constant 5.000000e-01 : f32
    %273 = vector.broadcast %cst_106 : f32 to vector<16x64xf32>
    %274 = arith.mulf %273, %272 : vector<16x64xf32>
    %cst_107 = arith.constant 4.471500e-02 : f32
    %275 = vector.broadcast %cst_107 : f32 to vector<16x64xf32>
    %276 = arith.mulf %275, %272 : vector<16x64xf32>
    %277 = arith.mulf %276, %272 : vector<16x64xf32>
    %278 = arith.mulf %277, %272 : vector<16x64xf32>
    %279 = arith.addf %272, %278 : vector<16x64xf32>
    %cst_108 = arith.constant 0.797884583 : f32
    %280 = vector.broadcast %cst_108 : f32 to vector<16x64xf32>
    %281 = arith.mulf %280, %279 : vector<16x64xf32>
    %282 = math.tanh %281 : vector<16x64xf32>
    %cst_109 = arith.constant 1.000000e+00 : f32
    %283 = vector.broadcast %cst_109 : f32 to vector<16x64xf32>
    %284 = arith.addf %283, %282 : vector<16x64xf32>
    %285 = arith.mulf %274, %284 : vector<16x64xf32>
    %c1_110 = arith.constant 1 : index
    %c0_111 = arith.constant 0 : index
    %c0_112 = arith.constant 0 : index
    %286 = vector.load %arg14[%c1_110, %c0_111, %c0_112] : memref<2x64x32xf32, #tpu.memory_space<vmem>>, vector<1x64x32xf32>
    %287 = vector.shape_cast %286 : vector<1x64x32xf32> to vector<64x32xf32>
    %cst_113 = arith.constant dense<0.000000e+00> : vector<16x32xf32>
    %288 = tpu.matmul %285, %287, %cst_113 {dimension_numbers = #tpu.dot_dimension_numbers<[1], [0], [0], [1], [0, 0, 1, 1], [], []>} : vector<16x64xf32>, vector<64x32xf32>, vector<16x32xf32> -> vector<16x32xf32>
    %c1_114 = arith.constant 1 : index
    %c0_115 = arith.constant 0 : index
    %c0_116 = arith.constant 0 : index
    %289 = vector.load %arg15[%c1_114, %c0_115, %c0_116] : memref<2x1x32xf32, #tpu.memory_space<vmem>>, vector<1x1x32xf32>
    %290 = vector.shape_cast %289 : vector<1x1x32xf32> to vector<1x32xf32>
    %291 = vector.broadcast %290 : vector<1x32xf32> to vector<16x32xf32>
    %292 = arith.addf %288, %291 : vector<16x32xf32>
    %293 = arith.addf %292, %265 : vector<16x32xf32>
    %c1_117 = arith.constant 1 : index
    %c0_118 = arith.constant 0 : index
    %c0_119 = arith.constant 0 : index
    %294 = vector.load %arg16[%c1_117, %c0_118, %c0_119] : memref<2x1x32xf32, #tpu.memory_space<vmem>>, vector<1x1x32xf32>
    %295 = vector.shape_cast %294 : vector<1x1x32xf32> to vector<1x32xf32>
    %c1_120 = arith.constant 1 : index
    %c0_121 = arith.constant 0 : index
    %c0_122 = arith.constant 0 : index
    %296 = vector.load %arg17[%c1_120, %c0_121, %c0_122] : memref<2x1x32xf32, #tpu.memory_space<vmem>>, vector<1x1x32xf32>
    %297 = vector.shape_cast %296 : vector<1x1x32xf32> to vector<1x32xf32>
    %cst_123 = arith.constant dense<0.000000e+00> : vector<16xf32>
    %298 = vector.multi_reduction <add>, %293, %cst_123 [1] : vector<16x32xf32> to vector<16xf32>
    %299 = vector.shape_cast %298 : vector<16xf32> to vector<16x1xf32>
    %cst_124 = arith.constant 3.200000e+01 : f32
    %300 = vector.broadcast %cst_124 : f32 to vector<16x1xf32>
    %301 = arith.divf %299, %300 : vector<16x1xf32>
    %302 = vector.broadcast %301 : vector<16x1xf32> to vector<16x32xf32>
    %303 = arith.subf %293, %302 : vector<16x32xf32>
    %304 = arith.mulf %303, %303 : vector<16x32xf32>
    %cst_125 = arith.constant dense<0.000000e+00> : vector<16xf32>
    %305 = vector.multi_reduction <add>, %304, %cst_125 [1] : vector<16x32xf32> to vector<16xf32>
    %306 = vector.shape_cast %305 : vector<16xf32> to vector<16x1xf32>
    %cst_126 = arith.constant 3.200000e+01 : f32
    %307 = vector.broadcast %cst_126 : f32 to vector<16x1xf32>
    %308 = arith.divf %306, %307 : vector<16x1xf32>
    %309 = vector.broadcast %301 : vector<16x1xf32> to vector<16x32xf32>
    %310 = arith.subf %293, %309 : vector<16x32xf32>
    %cst_127 = arith.constant 9.99999996E-13 : f32
    %311 = vector.broadcast %cst_127 : f32 to vector<16x1xf32>
    %312 = arith.addf %308, %311 : vector<16x1xf32>
    %313 = math.rsqrt %312 : vector<16x1xf32>
    %314 = vector.broadcast %313 : vector<16x1xf32> to vector<16x32xf32>
    %315 = arith.mulf %310, %314 : vector<16x32xf32>
    %316 = vector.broadcast %295 : vector<1x32xf32> to vector<16x32xf32>
    %317 = arith.mulf %315, %316 : vector<16x32xf32>
    %318 = vector.broadcast %297 : vector<1x32xf32> to vector<16x32xf32>
    %319 = arith.addf %317, %318 : vector<16x32xf32>
    %c0_128 = arith.constant 0 : index
    %c0_129 = arith.constant 0 : index
    %320 = vector.load %arg18[%c0_128, %c0_129] : memref<32x16xf32, #tpu.memory_space<vmem>>, vector<32x16xf32>
    %cst_130 = arith.constant dense<0.000000e+00> : vector<16x16xf32>
    %321 = tpu.matmul %319, %320, %cst_130 {dimension_numbers = #tpu.dot_dimension_numbers<[1], [0], [0], [1], [0, 0, 1, 1], [], []>} : vector<16x32xf32>, vector<32x16xf32>, vector<16x16xf32> -> vector<16x16xf32>
    %c0_131 = arith.constant 0 : index
    %c0_132 = arith.constant 0 : index
    %322 = vector.load %arg19[%c0_131, %c0_132] : memref<1x16xf32, #tpu.memory_space<vmem>>, vector<1x16xf32>
    %323 = vector.broadcast %322 : vector<1x16xf32> to vector<16x16xf32>
    %324 = arith.addf %321, %323 : vector<16x16xf32>
    %cst_133 = arith.constant 0.000000e+00 : f32
    %325 = vector.broadcast %cst_133 : f32 to vector<16x16xf32>
    %326 = arith.maximumf %324, %325 : vector<16x16xf32>
    %c0_134 = arith.constant 0 : index
    %c0_135 = arith.constant 0 : index
    %327 = vector.load %arg20[%c0_134, %c0_135] : memref<16x128xf32, #tpu.memory_space<vmem>>, vector<16x128xf32>
    %cst_136 = arith.constant dense<0.000000e+00> : vector<16x128xf32>
    %328 = tpu.matmul %326, %327, %cst_136 {dimension_numbers = #tpu.dot_dimension_numbers<[1], [0], [0], [1], [0, 0, 1, 1], [], []>} : vector<16x16xf32>, vector<16x128xf32>, vector<16x128xf32> -> vector<16x128xf32>
    %c0_137 = arith.constant 0 : index
    %c0_138 = arith.constant 0 : index
    %329 = vector.load %arg21[%c0_137, %c0_138] : memref<1x128xf32, #tpu.memory_space<vmem>>, vector<1x128xf32>
    %330 = vector.broadcast %329 : vector<1x128xf32> to vector<16x128xf32>
    %331 = arith.addf %328, %330 : vector<16x128xf32>
    %c0_139 = arith.constant 0 : index
    %c0_140 = arith.constant 0 : index
    %332 = vector.load %arg28[%c0_139, %c0_140] : memref<16x128xf32, #tpu.memory_space<vmem>>, vector<16x128xf32>
    tpu.vector_store %arg28[%c0_139, %c0_140], %331 {strides = array<i32>} : memref<16x128xf32, #tpu.memory_space<vmem>>, vector<16x128xf32>,
    %c0_141 = arith.constant 0 : index
    %c0_142 = arith.constant 0 : index
    %333 = vector.load %arg2[%c0_141, %c0_142] : memref<16x1xf32, #tpu.memory_space<vmem>>, vector<16x1xf32>
    %334 = vector.broadcast %333 : vector<16x1xf32> to vector<16x32xf32>
    %335 = arith.mulf %319, %334 : vector<16x32xf32>
    %336 = vector.shape_cast %335 : vector<16x32xf32> to vector<2x8x32xf32>
    %cst_143 = arith.constant dense<0.000000e+00> : vector<2x32xf32>
    %337 = vector.multi_reduction <add>, %336, %cst_143 [1] : vector<2x8x32xf32> to vector<2x32xf32>
    %c0_144 = arith.constant 0 : index
    %c0_145 = arith.constant 0 : index
    %338 = vector.load %arg3[%c0_144, %c0_145] : memref<2x1xf32, #tpu.memory_space<vmem>>, vector<2x1xf32>
    %339 = vector.broadcast %338 : vector<2x1xf32> to vector<2x32xf32>
    %340 = arith.mulf %337, %339 : vector<2x32xf32>
    %c0_146 = arith.constant 0 : index
    %c0_147 = arith.constant 0 : index
    %341 = vector.load %arg22[%c0_146, %c0_147] : memref<32x32xf32, #tpu.memory_space<vmem>>, vector<32x32xf32>
    %cst_148 = arith.constant dense<0.000000e+00> : vector<2x32xf32>
    %342 = tpu.matmul %340, %341, %cst_148 {dimension_numbers = #tpu.dot_dimension_numbers<[1], [0], [0], [1], [0, 0, 1, 1], [], []>} : vector<2x32xf32>, vector<32x32xf32>, vector<2x32xf32> -> vector<2x32xf32>
    %c0_149 = arith.constant 0 : index
    %c0_150 = arith.constant 0 : index
    %343 = vector.load %arg23[%c0_149, %c0_150] : memref<1x32xf32, #tpu.memory_space<vmem>>, vector<1x32xf32>
    %344 = vector.broadcast %343 : vector<1x32xf32> to vector<2x32xf32>
    %345 = arith.addf %342, %344 : vector<2x32xf32>
    %cst_151 = arith.constant 0.000000e+00 : f32
    %346 = vector.broadcast %cst_151 : f32 to vector<2x32xf32>
    %347 = arith.maximumf %345, %346 : vector<2x32xf32>
    %c0_152 = arith.constant 0 : index
    %c0_153 = arith.constant 0 : index
    %348 = vector.load %arg24[%c0_152, %c0_153] : memref<32x16xf32, #tpu.memory_space<vmem>>, vector<32x16xf32>
    %cst_154 = arith.constant dense<0.000000e+00> : vector<2x16xf32>
    %349 = tpu.matmul %347, %348, %cst_154 {dimension_numbers = #tpu.dot_dimension_numbers<[1], [0], [0], [1], [0, 0, 1, 1], [], []>} : vector<2x32xf32>, vector<32x16xf32>, vector<2x16xf32> -> vector<2x16xf32>
    %c0_155 = arith.constant 0 : index
    %c0_156 = arith.constant 0 : index
    %350 = vector.load %arg25[%c0_155, %c0_156] : memref<1x16xf32, #tpu.memory_space<vmem>>, vector<1x16xf32>
    %351 = vector.broadcast %350 : vector<1x16xf32> to vector<2x16xf32>
    %352 = arith.addf %349, %351 : vector<2x16xf32>
    %cst_157 = arith.constant 0.000000e+00 : f32
    %353 = vector.broadcast %cst_157 : f32 to vector<2x16xf32>
    %354 = arith.maximumf %352, %353 : vector<2x16xf32>
    %c0_158 = arith.constant 0 : index
    %c0_159 = arith.constant 0 : index
    %355 = vector.load %arg26[%c0_158, %c0_159] : memref<16x128xf32, #tpu.memory_space<vmem>>, vector<16x128xf32>
    %cst_160 = arith.constant dense<0.000000e+00> : vector<2x128xf32>
    %356 = tpu.matmul %354, %355, %cst_160 {dimension_numbers = #tpu.dot_dimension_numbers<[1], [0], [0], [1], [0, 0, 1, 1], [], []>} : vector<2x16xf32>, vector<16x128xf32>, vector<2x128xf32> -> vector<2x128xf32>
    %c0_161 = arith.constant 0 : index
    %c0_162 = arith.constant 0 : index
    %357 = vector.load %arg27[%c0_161, %c0_162] : memref<1x128xf32, #tpu.memory_space<vmem>>, vector<1x128xf32>
    %358 = vector.broadcast %357 : vector<1x128xf32> to vector<2x128xf32>
    %359 = arith.addf %356, %358 : vector<2x128xf32>
    %c0_163 = arith.constant 0 : index
    %c0_164 = arith.constant 0 : index
    %360 = vector.load %arg29[%c0_163, %c0_164] : memref<2x128xf32, #tpu.memory_space<vmem>>, vector<2x128xf32>
    tpu.vector_store %arg29[%c0_163, %c0_164], %359 {strides = array<i32>} : memref<2x128xf32, #tpu.memory_space<vmem>>, vector<2x128xf32>,
    return
  }
}

</mosaic_0001>

<bundles_post_ra>
// kernel: multitask_bert_forward.1
= control target key start
LH: loop header
LB: loop body
LE: loop exit
PB: predicated region body
PF: predicated region fallthrough
CT: control target
= control target key end

     0   :  { %s4323_s6 = smov 1   ;;  %s4324_s10 = smov 2   ;;  %s4930_s0 = inlined_call_operand.smem [shape: u32[30], index: -1, kind: input, shape index: {}] }
   0x1   :  { %s4373_s5 = sld [smem:[%s4930_s0]]   ;;  %s4325_s14 = smov 3  }
   0x2   :  { %s4378_s9 = sld [smem:[%s4930_s0 + %s4323_s6]]   ;;  %s4326_s18 = smov 4  }
   0x3   :  { %s4383_s13 = sld [smem:[%s4930_s0 + %s4324_s10]]   ;;  %s4327_s22 = smov 5  }
   0x4   :  { %s4388_s17 = sld [smem:[%s4930_s0 + %s4325_s14]]   ;;  %s4328_s26 = smov 6  }
   0x5   :  { %s4393_s21 = sld [smem:[%s4930_s0 + %s4326_s18]]   ;;  %s4329_s30 = smov 7  }
   0x6   :  { %s4398_s25 = sld [smem:[%s4930_s0 + %s4327_s22]]   ;;  %s4330_s4 = smov 8  }
   0x7   :  { %s4403_s29 = sld [smem:[%s4930_s0 + %s4328_s26]]   ;;  %s4331_s10 = smov 9  }
   0x8   :  { %s4408_s3 = sld [smem:[%s4930_s0 + %s4329_s30]]   ;;  %s4332_s15 = smov 10  }
   0x9   :  { %4938 = sst [smem:[#allocation5_spill]] %s4383_s13  ;;  %s4333_s20 = smov 11  }
   0xa   :  { %4939 = sst [smem:[#allocation6_spill]] %s4388_s17  ;;  %s4334_s26 = smov 12  }
   0xb   :  { %s4413_s8 = sld [smem:[%s4930_s0 + %s4330_s4]]   ;;  %s4335_s1 = smov 13  }
   0xc   :  { %s4418_s14 = sld [smem:[%s4930_s0 + %s4331_s10]]   ;;  %s4336_s7 = smov 14  }
   0xd   :  { %s4423_s19 = sld [smem:[%s4930_s0 + %s4332_s15]]   ;;  %s4337_s15 = smov 15  }
   0xe   :  { %s4428_s24 = sld [smem:[%s4930_s0 + %s4333_s20]]   ;;  %s4338_s22 = smov 16  }
   0xf   :  { %s4433_s30 = sld [smem:[%s4930_s0 + %s4334_s26]]   ;;  %s4339_s28 = smov 17  }
  0x10   :  { %s4438_s6 = sld [smem:[%s4930_s0 + %s4335_s1]]  }
  0x11   :  { %s4443_s12 = sld [smem:[%s4930_s0 + %s4336_s7]]   ;;  %s4340_s7 = smov 18  }
  0x12   :  { %s4448_s20 = sld [smem:[%s4930_s0 + %s4337_s15]]   ;;  %s4341_s15 = smov 19  }
  0x13   :  { %s4453_s27 = sld [smem:[%s4930_s0 + %s4338_s22]]   ;;  %s4342_s22 = smov 20  }
  0x14   :  { %s4458_s4 = sld [smem:[%s4930_s0 + %s4339_s28]]   ;;  %s4343_s28 = smov 21  }
  0x15   :  { %s4463_s17 = sld [smem:[%s4930_s0 + %s4340_s7]]   ;;  %s4344_s7 = smov 22  }
  0x16   :  { %s4468_s13 = sld [smem:[%s4930_s0 + %s4341_s15]]   ;;  %s4345_s15 = smov 23  }
  0x19   :  { %4940 = sst [smem:[#allocation7_spill]] %s4453_s27 }
  0x1a   :  { %4941 = sst [smem:[#allocation8_spill]] %s4458_s4 }
  0x1b   :  { %4942 = sst [smem:[#allocation9_spill]] %s4463_s17 }
  0x1c   :  { %4943 = sst [smem:[#allocation10_spill]] %s4468_s13 }
  0x1d   :  { %s4473_s27 = sld [smem:[%s4930_s0 + %s4342_s22]]   ;;  %s4346_s22 = smov 24  }
  0x1e   :  { %s4478_s4 = sld [smem:[%s4930_s0 + %s4343_s28]]   ;;  %s4347_s28 = smov 25  }
  0x1f   :  { %s4483_s17 = sld [smem:[%s4930_s0 + %s4344_s7]]   ;;  %s4348_s7 = smov 26  }
  0x20   :  { %s4488_s13 = sld [smem:[%s4930_s0 + %s4345_s15]]   ;;  %s4349_s15 = smov 27  }
  0x23   :  { %4944 = sst [smem:[#allocation11_spill]] %s4473_s27 }
  0x24   :  { %4945 = sst [smem:[#allocation12_spill]] %s4478_s4 }
  0x25   :  { %4946 = sst [smem:[#allocation13_spill]] %s4483_s17 }
  0x26   :  { %4947 = sst [smem:[#allocation14_spill]] %s4488_s13 }
  0x27   :  { %s4493_s27 = sld [smem:[%s4930_s0 + %s4346_s22]]   ;;  %s4350_s22 = smov 28  }
  0x28   :  { %s4498_s4 = sld [smem:[%s4930_s0 + %s4347_s28]]   ;;  %s4351_s28 = smov 29  }
  0x29   :  { %s4503_s17 = sld [smem:[%s4930_s0 + %s4348_s7]]  }
  0x2a   :  { %s4508_s13 = sld [smem:[%s4930_s0 + %s4349_s15]]  }
  0x2d   :  { %4948 = sst [smem:[#allocation15_spill]] %s4493_s27 }
  0x2e   :  { %4949 = sst [smem:[#allocation16_spill]] %s4498_s4 }
  0x2f   :  { %s4513_s27 = sld [smem:[%s4930_s0 + %s4350_s22]]  }
  0x30   :  { %s4518_s4 = sld [smem:[%s4930_s0 + %s4351_s28]]  }
  0x31   :  { %v124_v0 = vld [vmem:[%s4373_s5] sm:$0xff]  ;;  %vm128_vm0 = vcmask 261120   ;;  %v125_v1 = vld [vmem:[%s4373_s5 + $0x8] sm:$0xff] }
  0x32   :  { %65 = vsyncpa [#allocation3], 0  ;;  %v129_v2 = vsel %vm128_vm0, %v124_v0, 0.0  ;;  %v132_v3 = vsel %vm128_vm0, %v125_v1, 0.0  ;;  %v172_v14 = vld [vmem:[%s4403_s29] sm:$0xff]  ;;  %v173_v15 = vld [vmem:[%s4403_s29 + $0x8] sm:$0xff] }
  0x33   :  { %130 = vadd.xlane.f32.xlu0 %v129_v2  ;;  %v174_v16 = vld [vmem:[%s4403_s29 + $0x10] sm:$0xff]  ;;  %v3896_v17 = vpack.c.bf16 %v173_v15, %v172_v14  ;;  %v175_v18 = vld [vmem:[%s4403_s29 + $0x18] sm:$0xff]  ;;  %v3368_v27 = vld [vmem:[%s4393_s21] ss:$0 sm:$0xff]  ;;  %vm282_vm1 = vcmask 64512   ;;  %s4352_s0 = smov 120  }
  0x34   :  { %v3900_v19 = vpack.c.bf16 %v175_v18, %v174_v16  ;;  %v3369_v29 = vld [vmem:[%s4398_s25] ss:$0 sm:$0xff]  ;;  %s4353_s5 = smov 112   ;;  %s4354_s21 = smov 104   ;;  %vm4563_vm2 = vmpackc.low %vm282_vm1, %vm282_vm1  ;;  %vm643_vm3 = vcmask 130048   ;;  %vm1108_vm4 = vcmask 195584  }
  0x35   :  { %3897 = vmatprep.subr.bf16.mxu0 %v3896_v17  ;;  %v3370_v36 = vld [vmem:[%s4408_s3] ss:$0 sm:$0xff]  ;;  %s4355_s25 = smov 96   ;;  %s4357_s7 = smov 8   ;;  %vm1374_vm5 = vcmask 523264   ;;  %vm3078_vm6 = vcmask 1041409  }
  0x36   :  { %3899 = vmatpush3.bf16.msra.mxu0 %v3896_v17  ;;  %s4358_s10 = smov 16   ;;  %s4359_s11 = smov 24   ;;  %vm4362_vm7 = vmmov 0  }
  0x37   :  { %133 = vadd.xlane.f32.xlu0 %v132_v3  ;;  %3901 = vmatprep.subr.bf16.mxu0 %v3900_v19  ;;  %s4952_s15 = sld [smem:[#allocation7_spill]]  ;;  %s4953_s16 = sld [smem:[#allocation8_spill]] }
  0x3a   :  { %3903 = vmatpush3.bf16.msra.mxu0 %v3900_v19 }
  0xc0   :  { %v131_v4 = vpop.xlane.xlu0 %130 }
  0xc1   :  { %v136_v5 = vmul.f32 0.03125, %v131_v4 }
  0xc3   :  { %v138_v6 = vsub.f32 %v124_v0, %v136_v5  ;;  %v4594_v5 = vld [vmem:[%s4378_s9 + $0x8] sm:$0xff] }
  0xc4   :  { %v134_v7 = vpop.xlane.xlu0 %133 }
  0xc5   :  { %v137_v8 = vmul.f32 0.03125, %v134_v7  ;;  %v140_v9 = vmul.f32 %v138_v6, %v138_v6 }
  0xc7   :  { %v139_v10 = vsub.f32 %v125_v1, %v137_v8  ;;  %v142_v11 = vsel %vm128_vm0, %v140_v9, 0.0  ;;  %v4597_v8 = vld [vmem:[%s4378_s9] sm:$0xff]  ;;  %s4356_s9 = smov 64  }
  0xc8   :  { %143 = vadd.xlane.f32.xlu1 %v142_v11 }
  0xc9   :  { %v141_v12 = vmul.f32 %v139_v10, %v139_v10 }
  0xcb   :  { %v145_v13 = vsel %vm128_vm0, %v141_v12, 0.0 }
  0xcc   :  { %146 = vadd.xlane.f32.xlu1 %v145_v13 }
 0x155   :  { %v144_v20 = vpop.xlane.xlu1 %143 }
 0x156   :  { %v148_v21 = vmul.f32 0.03125, %v144_v20 }
 0x158   :  { %v150_v22 = vadd.f32 1e-12, %v148_v21 }
 0x159   :  { %v147_v23 = vpop.xlane.xlu1 %146 }
 0x15a   :  { %4207 = vrsqrt.f32 %v150_v22  ;;  %v149_v24 = vmul.f32 0.03125, %v147_v23 }
 0x15c   :  { %v151_v25 = vadd.f32 1e-12, %v149_v24 }
 0x15e   :  { %4209 = vrsqrt.f32 %v151_v25 }
 0x164   :  { %v4208_v26 = vpop.eup %4207 }
 0x165   :  { %v154_v28 = vmul.f32 %v4208_v26, %v138_v6 }
 0x167   :  { %v162_v30 = vmul.f32 %v3368_v27, %v154_v28 }
 0x168   :  { %v4210_v31 = vpop.eup %4209 }
 0x169   :  { %v155_v32 = vmul.f32 %v4210_v31, %v139_v10  ;;  %v4532_v33 = vadd.f32 %v3369_v29, %v162_v30 }
 0x16b   :  { %v163_v34 = vmul.f32 %v3368_v27, %v155_v32  ;;  %3641 = vmatprep.mubr.msk.f32.mxu0 %vm128_vm0, %v4532_v33 }
 0x16d   :  { %v4536_v35 = vadd.f32 %v3369_v29, %v163_v34 }
 0x16f   :  { %3642 = vmatmul.mubr.msk.f32.vlgmr.msra.gmra.mrb[0].mxu0 %vm128_vm0, %v4536_v35 }
 0x242   :  { %v3643_v37 = vpop.f32.mrb[0].mxu0 }
 0x243   :  { %v261_v38 = vadd.f32 %v3643_v37, %v3370_v36  ;;  %v255_v39 = vpop.f32.mrb[1].mxu0 }
 0x244   :  { %v256_v40 = vadd.f32 %v3370_v36, %v255_v39 }
 0x245   :  { %268 = vrot.lane.b32.xlu1 %v261_v38, %s4352_s0 }
 0x246   :  { %266 = vrot.lane.b32.xlu0 %v256_v40, %s4352_s0  ;;  %3648 = vmatprep.mubr.msk.f32.mxu1 %vm282_vm1, %v256_v40  ;;  %v4546_v41 = vpack.i.bf16 %v261_v38, %v256_v40 }
 0x249   :  { %272 = vrot.lane.b32.xlu1 %v261_v38, %s4353_s5 }
 0x24a   :  { %274 = vrot.lane.b32.xlu0 %v256_v40, %s4354_s21 }
 0x24d   :  { %270 = vrot.lane.b32.xlu1 %v256_v40, %s4353_s5 }
 0x24e   :  { %4126 = vrot.lane.b32.xlu0 %v4546_v41, %s4355_s25 }
 0x251   :  { %276 = vrot.lane.b32.xlu1 %v261_v38, %s4354_s21 }
 0x2b7   :  { %v269_v42 = vpop.permute.xlu1 %268 }
 0x2b8   :  { %v267_v43 = vpop.permute.xlu0 %266 }
 0x2b9   :  { %v4552_v44 = vpack.i.bf16 %v269_v42, %v267_v43  ;;  %3655 = vmatprep.mubr.msk.f32.mxu0 %vm282_vm1, %v267_v43 }
 0x2bb   :  { %v273_v45 = vpop.permute.xlu1 %272  ;;  %4131 = vrot.lane.b32.xlu1 %v4552_v44, %s4355_s25 }
 0x2bc   :  { %v275_v46 = vpop.permute.xlu0 %274 }
 0x2bf   :  { %v271_v47 = vpop.permute.xlu1 %270 }
 0x2c0   :  { %v4557_v48 = vpack.i.bf16 %v273_v45, %v271_v47  ;;  %v4127_v49 = vpop.permute.xlu0 %4126 }
 0x2c1   :  { %v4129_v50 = vunpack.i.h.bf16 %v4127_v49  ;;  %v4128_v51 = vunpack.i.l.bf16 %v4127_v49 }
 0x2c2   :  { %4136 = vrot.lane.b32.xlu0 %v4557_v48, %s4355_s25 }
 0x2c3   :  { %v277_v53 = vpop.permute.xlu1 %276  ;;  %v3904_v54 = vpack.c.bf16 %v4129_v50, %v4128_v51 }
 0x2c4   :  { %v4567_v55 = vpack.i.bf16 %v277_v53, %v275_v46 }
 0x2c5   :  { %3906 = vmatprep.subr.msk.bf16.mxu1 %vm4563_vm2, %v3904_v54 }
 0x2c6   :  { %4141 = vrot.lane.b32.xlu1 %v4567_v55, %s4355_s25  ;;  %3909 = vmatpush3.bf16.xpose.msk.msra.mxu1 %vm4563_vm2, %v3904_v54 }
 0x2cd   :  { %3649 = vmatmul.mubr.msk.f32.vlgmr.msra.gmra.mrb[0].mxu1 %vm282_vm1, %v261_v38 }
 0x2ce   :  { %3662 = vmatprep.mubr.msk.f32.mxu1 %vm282_vm1, %v271_v47 }
 0x32d   :  { %v4132_v56 = vpop.permute.xlu1 %4131 }
 0x32e   :  { %v4134_v57 = vunpack.i.h.bf16 %v4132_v56  ;;  %v4133_v58 = vunpack.i.l.bf16 %v4132_v56 }
 0x330   :  { %v3910_v59 = vpack.c.bf16 %v4134_v57, %v4133_v58 }
 0x332   :  { %3912 = vmatprep.subr.msk.bf16.mxu0 %vm4563_vm2, %v3910_v59 }
 0x333   :  { %3915 = vmatpush3.bf16.xpose.msk.msra.mxu0 %vm4563_vm2, %v3910_v59 }
 0x334   :  { %v4137_v60 = vpop.permute.xlu0 %4136 }
 0x335   :  { %v4139_v61 = vunpack.i.h.bf16 %v4137_v60  ;;  %v4138_v62 = vunpack.i.l.bf16 %v4137_v60 }
 0x337   :  { %v3916_v63 = vpack.c.bf16 %v4139_v61, %v4138_v62 }
 0x338   :  { %v4142_v0 = vpop.permute.xlu1 %4141 }
 0x339   :  { %v4144_v1 = vunpack.i.h.bf16 %v4142_v0  ;;  %v4143_v2 = vunpack.i.l.bf16 %v4142_v0  ;;  %3918 = vmatprep.subr.msk.bf16.mxu1 %vm4563_vm2, %v3916_v63 }
 0x33a   :  { %3656 = vmatmul.mubr.msk.f32.vlgmr.msra.gmra.mrb[2].mxu0 %vm282_vm1, %v269_v42  ;;  %3921 = vmatpush3.bf16.xpose.msk.msra.mxu1 %vm4563_vm2, %v3916_v63 }
 0x33b   :  { %v3922_v3 = vpack.c.bf16 %v4144_v1, %v4143_v2  ;;  %3669 = vmatprep.mubr.msk.f32.mxu0 %vm282_vm1, %v275_v46 }
 0x33d   :  { %3924 = vmatprep.subr.msk.bf16.mxu0 %vm4563_vm2, %v3922_v3 }
 0x33e   :  { %3927 = vmatpush3.bf16.xpose.msk.msra.mxu0 %vm4563_vm2, %v3922_v3 }
 0x341   :  { %3663 = vmatmul.mubr.msk.f32.vlgmr.msra.gmra.mrb[2].mxu1 %vm282_vm1, %v273_v45 }
 0x345   :  { %3670 = vmatmul.mubr.msk.f32.vlgmr.msra.gmra.mrb[4].mxu0 %vm282_vm1, %v277_v53 }
 0x3a0   :  { %v3650_v4 = vpop.f32.mrb[0].mxu1 }
 0x3a1   :  { %v628_v6 = vmul.f32 0.35355338, %v3650_v4  ;;  %v357_v7 = vpop.f32.mrb[1].mxu1 }
 0x3a2   :  { %v627_v9 = vmul.f32 0.35355338, %v357_v7 }
 0x3a3   :  { %v636_v10 = vadd.f32 %v628_v6, %v4594_v5 }
 0x3a4   :  { %v635_v11 = vadd.f32 %v627_v9, %v4597_v8 }
 0x3a5   :  { %v647_v12 = vsel %vm643_vm3, %v636_v10, -inf }
 0x3a6   :  { %648 = vmax.xlane.f32.xlu1 %v647_v12  ;;  %v644_v13 = vsel %vm643_vm3, %v635_v11, -inf }
 0x3a7   :  { %645 = vmax.xlane.f32.xlu0 %v644_v13 }
 0x40d   :  { %v3657_v14 = vpop.f32.mrb[2].mxu0 }
 0x40e   :  { %v630_v15 = vmul.f32 0.35355338, %v3657_v14  ;;  %v444_v16 = vpop.f32.mrb[3].mxu0 }
 0x40f   :  { %v629_v17 = vmul.f32 0.35355338, %v444_v16 }
 0x410   :  { %v638_v18 = vadd.f32 %v630_v15, %v4594_v5 }
 0x411   :  { %v637_v20 = vadd.f32 %v629_v17, %v4597_v8 }
 0x412   :  { %v653_v19 = vsel %vm643_vm3, %v638_v18, -inf }
 0x413   :  { %654 = vmax.xlane.f32.xlu0 %v653_v19  ;;  %v650_v25 = vsel %vm643_vm3, %v637_v20, -inf }
 0x414   :  { %v3664_v21 = vpop.f32.mrb[2].mxu1 }
 0x415   :  { %v632_v22 = vmul.f32 0.35355338, %v3664_v21  ;;  %v531_v23 = vpop.f32.mrb[3].mxu1 }
 0x416   :  { %v631_v24 = vmul.f32 0.35355338, %v531_v23 }
 0x417   :  { %651 = vmax.xlane.f32.xlu0 %v650_v25  ;;  %v640_v26 = vadd.f32 %v632_v22, %v4594_v5 }
 0x418   :  { %v3671_v27 = vpop.f32.mrb[4].mxu0  ;;  %v639_v28 = vadd.f32 %v631_v24, %v4597_v8 }
 0x419   :  { %v634_v29 = vmul.f32 0.35355338, %v3671_v27  ;;  %v618_v30 = vpop.f32.mrb[5].mxu0  ;;  %v659_v31 = vsel %vm643_vm3, %v640_v26, -inf }
 0x41a   :  { %v633_v32 = vmul.f32 0.35355338, %v618_v30  ;;  %660 = vmax.xlane.f32.xlu1 %v659_v31  ;;  %v656_v34 = vsel %vm643_vm3, %v639_v28, -inf }
 0x41b   :  { %657 = vmax.xlane.f32.xlu0 %v656_v34  ;;  %v642_v36 = vadd.f32 %v634_v29, %v4594_v5 }
 0x41c   :  { %v641_v37 = vadd.f32 %v633_v32, %v4597_v8 }
 0x41d   :  { %v665_v38 = vsel %vm643_vm3, %v642_v36, -inf }
 0x41e   :  { %666 = vmax.xlane.f32.xlu1 %v665_v38  ;;  %v662_v39 = vsel %vm643_vm3, %v641_v37, -inf }
 0x41f   :  { %663 = vmax.xlane.f32.xlu0 %v662_v39 }
 0x433   :  { %v649_v40 = vpop.xlane.xlu1 %648 }
 0x434   :  { %v669_v42 = vsub.f32 %v636_v10, %v649_v40  ;;  %v646_v43 = vpop.xlane.xlu0 %645 }
 0x435   :  { %v668_v45 = vsub.f32 %v635_v11, %v646_v43 }
 0x436   :  { %v678_v46 = vmul.f32 1.442695, %v669_v42 }
 0x437   :  { %v676_v47 = vmul.f32 1.442695, %v668_v45 }
 0x438   :  { %4211 = vpow2.f32 %v678_v46 }
 0x439   :  { %4213 = vpow2.f32 %v676_v47 }
 0x442   :  { %v4615_v49 = vpop.eup %4211 }
 0x443   :  { %v4214_v50 = vpop.eup %4213  ;;  %v695_v51 = vsel %vm643_vm3, %v4615_v49, 0.0 }
 0x444   :  { %696 = vadd.xlane.f32.xlu1 %v695_v51  ;;  %v692_v53 = vsel %vm643_vm3, %v4214_v50, 0.0 }
 0x445   :  { %693 = vadd.xlane.f32.xlu0 %v692_v53 }
 0x4a0   :  { %v655_v54 = vpop.xlane.xlu0 %654 }
 0x4a1   :  { %v671_v56 = vsub.f32 %v638_v18, %v655_v54 }
 0x4a3   :  { %v682_v57 = vmul.f32 1.442695, %v671_v56 }
 0x4a4   :  { %v652_v58 = vpop.xlane.xlu0 %651 }
 0x4a5   :  { %4215 = vpow2.f32 %v682_v57  ;;  %v670_v59 = vsub.f32 %v637_v20, %v652_v58 }
 0x4a7   :  { %v680_v60 = vmul.f32 1.442695, %v670_v59  ;;  %v661_v61 = vpop.xlane.xlu1 %660 }
 0x4a8   :  { %v673_v62 = vsub.f32 %v640_v26, %v661_v61  ;;  %v658_v63 = vpop.xlane.xlu0 %657 }
 0x4a9   :  { %4217 = vpow2.f32 %v680_v60  ;;  %v672_v0 = vsub.f32 %v639_v28, %v658_v63 }
 0x4aa   :  { %v686_v1 = vmul.f32 1.442695, %v673_v62 }
 0x4ab   :  { %v684_v2 = vmul.f32 1.442695, %v672_v0  ;;  %v667_v3 = vpop.xlane.xlu1 %666 }
 0x4ac   :  { %4219 = vpow2.f32 %v686_v1  ;;  %v675_v4 = vsub.f32 %v642_v36, %v667_v3  ;;  %v664_v6 = vpop.xlane.xlu0 %663  ;;  %v1112_v3 = vld [vmem:[%s4413_s8 + $0x8] sm:$0xff] }
 0x4ad   :  { %4221 = vpow2.f32 %v684_v2  ;;  %v674_v7 = vsub.f32 %v641_v37, %v664_v6  ;;  %v1111_v2 = vld [vmem:[%s4413_s8] sm:$0xff]  ;;  %v1113_v6 = vld [vmem:[%s4413_s8 + $0x10] sm:$0xff] }
 0x4ae   :  { %v690_v9 = vmul.f32 1.442695, %v675_v4  ;;  %v3944_v4 = vpack.c.bf16 %v1112_v3, %v1111_v2 }
 0x4af   :  { %v4620_v10 = vpop.eup %4215  ;;  %v688_v11 = vmul.f32 1.442695, %v674_v7  ;;  %v1114_v7 = vld [vmem:[%s4413_s8 + $0x18] sm:$0xff] }
 0x4b0   :  { %4223 = vpow2.f32 %v690_v9  ;;  %v701_v12 = vsel %vm643_vm3, %v4620_v10, 0.0  ;;  %v3948_v9 = vpack.c.bf16 %v1114_v7, %v1113_v6 }
 0x4b1   :  { %4225 = vpow2.f32 %v688_v11  ;;  %702 = vadd.xlane.f32.xlu1 %v701_v12 }
 0x4b3   :  { %v4624_v13 = vpop.eup %4217 }
 0x4b4   :  { %v698_v14 = vsel %vm643_vm3, %v4624_v13, 0.0 }
 0x4b5   :  { %699 = vadd.xlane.f32.xlu0 %v698_v14 }
 0x4b6   :  { %v4628_v15 = vpop.eup %4219 }
 0x4b7   :  { %v4222_v16 = vpop.eup %4221  ;;  %v707_v17 = vsel %vm643_vm3, %v4628_v15, 0.0 }
 0x4b8   :  { %708 = vadd.xlane.f32.xlu1 %v707_v17  ;;  %v704_v18 = vsel %vm643_vm3, %v4222_v16, 0.0 }
 0x4b9   :  { %705 = vadd.xlane.f32.xlu0 %v704_v18 }
 0x4ba   :  { %v4633_v19 = vpop.eup %4223 }
 0x4bb   :  { %v4635_v20 = vpop.eup %4225  ;;  %v713_v21 = vsel %vm643_vm3, %v4633_v19, 0.0 }
 0x4bc   :  { %714 = vadd.xlane.f32.xlu1 %v713_v21  ;;  %v710_v22 = vsel %vm643_vm3, %v4635_v20, 0.0 }
 0x4bd   :  { %711 = vadd.xlane.f32.xlu0 %v710_v22 }
 0x4cd   :  { %4151 = vrot.lane.b32.xlu1 %v4552_v44, %s4356_s9 }
 0x4d1   :  { %4156 = vrot.lane.b32.xlu1 %v4557_v48, %s4356_s9  ;;  %v697_v26 = vpop.xlane.xlu1 %696 }
 0x4d2   :  { %v694_v23 = vpop.xlane.xlu0 %693 }
 0x4d3   :  { %4227 = vrcp.f32 %v694_v23  ;;  %4146 = vrot.lane.b32.xlu0 %v4546_v41, %s4356_s9 }
 0x4d5   :  { %4161 = vrot.lane.b32.xlu1 %v4567_v55, %s4356_s9 }
 0x4dd   :  { %v4228_v24 = vpop.eup %4227 }
 0x4de   :  { %v717_v25 = vmul.f32 %v4228_v24, %v4214_v50 }
 0x4e0   :  { %3676 = vmatprep.mubr.msk.f32.mxu1 %vm643_vm3, %v717_v25 }
 0x53e   :  { %v703_v27 = vpop.xlane.xlu1 %702 }
 0x542   :  { %v700_v28 = vpop.xlane.xlu0 %699 }
 0x545   :  { %v709_v29 = vpop.xlane.xlu1 %708 }
 0x546   :  { %v706_v44 = vpop.xlane.xlu0 %705 }
 0x547   :  { %4229 = vrcp.f32 %v706_v44  ;;  %v3397_v44 = vld [vmem:[%s4418_s14] ss:$0 sm:$0xff] }
 0x548   :  { %4231 = vrcp.f32 %v697_v26 }
 0x549   :  { %4233 = vrcp.f32 %v700_v28  ;;  %v715_v48 = vpop.xlane.xlu1 %714 }
 0x54a   :  { %v712_v30 = vpop.xlane.xlu0 %711  ;;  %4235 = vrcp.f32 %v709_v29 }
 0x54b   :  { %4237 = vrcp.f32 %v703_v27 }
 0x54c   :  { %4239 = vrcp.f32 %v712_v30 }
 0x54d   :  { %v4152_v41 = vpop.permute.xlu1 %4151  ;;  %4241 = vrcp.f32 %v715_v48 }
 0x54e   :  { %v4147_v31 = vpop.permute.xlu0 %4146  ;;  %v4154_v55 = vunpack.i.h.bf16 %v4152_v41  ;;  %v4153_v32 = vunpack.i.l.bf16 %v4152_v41 }
 0x54f   :  { %v4149_v34 = vunpack.i.h.bf16 %v4147_v31  ;;  %v4148_v36 = vunpack.i.l.bf16 %v4147_v31 }
 0x550   :  { %v3932_v47 = vpack.c.bf16 %v4154_v55, %v4153_v32 }
 0x551   :  { %v4230_v37 = vpop.eup %4229  ;;  %v3928_v38 = vpack.c.bf16 %v4149_v34, %v4148_v36  ;;  %v4157_v39 = vpop.permute.xlu1 %4156 }
 0x552   :  { %v4232_v40 = vpop.eup %4231  ;;  %v4159_v42 = vunpack.i.h.bf16 %v4157_v39  ;;  %v4158_v43 = vunpack.i.l.bf16 %v4157_v39  ;;  %v725_v45 = vmul.f32 %v4230_v37, %v4222_v16 }
 0x553   :  { %v4234_v46 = vpop.eup %4233  ;;  %3929 = vmatprep.subr.bf16.mxu1 %v3928_v38  ;;  %v719_v53 = vmul.f32 %v4232_v40, %v4615_v49 }
 0x554   :  { %v3936_v50 = vpack.c.bf16 %v4159_v42, %v4158_v43  ;;  %3931 = vmatpush3.bf16.msra.mxu1 %v3928_v38  ;;  %3690 = vmatprep.mubr.msk.f32.mxu0 %vm643_vm3, %v725_v45  ;;  %v4236_v51 = vpop.eup %4235  ;;  %v721_v59 = vmul.f32 %v4234_v46, %v4624_v13 }
 0x555   :  { %v4162_v54 = vpop.permute.xlu1 %4161  ;;  %3933 = vmatprep.subr.bf16.mxu1 %v3932_v47  ;;  %v4238_v56 = vpop.eup %4237  ;;  %v727_v61 = vmul.f32 %v4236_v51, %v4628_v15 }
 0x556   :  { %v4164_v57 = vunpack.i.h.bf16 %v4162_v54  ;;  %v4163_v58 = vunpack.i.l.bf16 %v4162_v54  ;;  %3937 = vmatprep.subr.bf16.mxu0 %v3936_v50  ;;  %v4240_v60 = vpop.eup %4239  ;;  %v723_v49 = vmul.f32 %v4238_v56, %v4620_v10  ;;  %v1252_v54 = vld [vmem:[%s4433_s30 + $0x18] sm:$0xff] }
 0x557   :  { %3677 = vmatmul.mubr.msk.f32.vlgmr.msra.gmra.mrb[4].mxu1 %vm643_vm3, %v719_v53  ;;  %3939 = vmatpush3.bf16.msra.mxu0 %v3936_v50  ;;  %v4242_v63 = vpop.eup %4241  ;;  %v729_v0 = vmul.f32 %v4240_v60, %v4635_v20  ;;  %v1250_v50 = vld [vmem:[%s4433_s30 + $0x8] sm:$0xff]  ;;  %v1251_v53 = vld [vmem:[%s4433_s30 + $0x10] sm:$0xff] }
 0x558   :  { %v3940_v62 = vpack.c.bf16 %v4164_v57, %v4163_v58  ;;  %3935 = vmatpush3.bf16.msra.mxu1 %v3932_v47  ;;  %3683 = vmatprep.mubr.msk.f32.mxu1 %vm643_vm3, %v721_v59  ;;  %v731_v1 = vmul.f32 %v4242_v63, %v4633_v19  ;;  %v1249_v47 = vld [vmem:[%s4433_s30] sm:$0xff]  ;;  %v3956_v56 = vpack.c.bf16 %v1252_v54, %v1251_v53 }
 0x559   :  { %3945 = vmatprep.subr.bf16.mxu0 %v3944_v4  ;;  %v3952_v51 = vpack.c.bf16 %v1250_v50, %v1249_v47  ;;  %v3400_v63 = vld [vmem:[%s4423_s19] ss:$0 sm:$0xff] }
 0x55a   :  { %3691 = vmatmul.mubr.msk.f32.vlgmr.msra.gmra.mrb[6].mxu0 %vm643_vm3, %v727_v61  ;;  %3941 = vmatprep.subr.bf16.mxu1 %v3940_v62 }
 0x55b   :  { %3684 = vmatmul.mubr.msk.f32.vlgmr.msra.gmra.mrb[6].mxu1 %vm643_vm3, %v723_v49  ;;  %3947 = vmatpush3.bf16.msra.mxu0 %v3944_v4 }
 0x55c   :  { %3943 = vmatpush3.bf16.msra.mxu1 %v3940_v62  ;;  %3697 = vmatprep.mubr.msk.f32.mxu1 %vm643_vm3, %v729_v0 }
 0x55d   :  { %3949 = vmatprep.subr.bf16.mxu0 %v3948_v9  ;;  %3953 = vmatprep.subr.bf16.mxu1 %v3952_v51 }
 0x55f   :  { %3698 = vmatmul.mubr.msk.f32.vlgmr.msra.gmra.mrb[8].mxu1 %vm643_vm3, %v731_v1  ;;  %3951 = vmatpush3.bf16.msra.mxu0 %v3948_v9  ;;  %v3401_v1 = vld [vmem:[%s4428_s24] ss:$0 sm:$0xff] }
 0x560   :  { %3955 = vmatpush3.bf16.msra.mxu1 %v3952_v51 }
 0x561   :  { %3957 = vmatprep.subr.bf16.mxu1 %v3956_v56 }
 0x564   :  { %3959 = vmatpush3.bf16.msra.mxu1 %v3956_v56 }
 0x62a   :  { %v3678_v10 = vpop.f32.mrb[4].mxu1 }
 0x62b   :  { %v810_v11 = vpop.f32.mrb[5].mxu1 }
 0x62d   :  { %v3692_v12 = vpop.f32.mrb[6].mxu0 }
 0x62e   :  { %v3685_v13 = vpop.f32.mrb[6].mxu1  ;;  %v984_v14 = vpop.f32.mrb[7].mxu0 }
 0x62f   :  { %1084 = vrot.lane.b32.xlu1 %v3685_v13, %s4357_s7  ;;  %v897_v15 = vpop.f32.mrb[7].mxu1  ;;  %v1361_v13 = vld [vmem:[%s4443_s12 + $0x10] sm:$0xff] }
 0x630   :  { %1082 = vrot.lane.b32.xlu0 %v897_v15, %s4357_s7  ;;  %v1363_v15 = vld [vmem:[%s4443_s12 + $0x20] sm:$0xff] }
 0x632   :  { %v3699_v16 = vpop.f32.mrb[8].mxu1 }
 0x633   :  { %1092 = vrot.lane.b32.xlu1 %v3692_v12, %s4358_s10  ;;  %v1071_v17 = vpop.f32.mrb[9].mxu1 }
 0x634   :  { %1090 = vrot.lane.b32.xlu0 %v984_v14, %s4358_s10  ;;  %v1362_v14 = vld [vmem:[%s4443_s12 + $0x18] sm:$0xff] }
 0x637   :  { %1100 = vrot.lane.b32.xlu1 %v3699_v16, %s4359_s11  ;;  %v3964_v16 = vpack.c.bf16 %v1362_v14, %v1361_v13 }
 0x638   :  { %1098 = vrot.lane.b32.xlu0 %v1071_v17, %s4359_s11  ;;  %v1364_v17 = vld [vmem:[%s4443_s12 + $0x28] sm:$0xff] }
 0x6a1   :  { %v1085_v18 = vpop.permute.xlu1 %1084 }
 0x6a2   :  { %v1083_v19 = vpop.permute.xlu0 %1082  ;;  %v1105_v24 = vsel %vm282_vm1, %v3678_v10, %v1085_v18  ;;  %v1359_v10 = vld [vmem:[%s4443_s12] sm:$0xff]  ;;  %v3968_v18 = vpack.c.bf16 %v1364_v17, %v1363_v15 }
 0x6a3   :  { %v1104_v22 = vsel %vm282_vm1, %v810_v11, %v1083_v19  ;;  %v1360_v11 = vld [vmem:[%s4443_s12 + $0x8] sm:$0xff]  ;;  %v1365_v19 = vld [vmem:[%s4443_s12 + $0x30] sm:$0xff] }
 0x6a4   :  { %v3960_v12 = vpack.c.bf16 %v1360_v11, %v1359_v10 }
 0x6a5   :  { %v1093_v20 = vpop.permute.xlu1 %1092 }
 0x6a6   :  { %v1091_v21 = vpop.permute.xlu0 %1090  ;;  %v1107_v27 = vsel %vm643_vm3, %v1105_v24, %v1093_v20  ;;  %3961 = vmatprep.subr.bf16.mxu0 %v3960_v12  ;;  %v1366_v20 = vld [vmem:[%s4443_s12 + $0x38] sm:$0xff] }
 0x6a7   :  { %v1106_v25 = vsel %vm643_vm3, %v1104_v22, %v1091_v21  ;;  %v3972_v21 = vpack.c.bf16 %v1366_v20, %v1365_v19  ;;  %v3402_v22 = vld [vmem:[%s4438_s6] ss:$0 sm:$0xff] }
 0x6a8   :  { %v3409_v20 = vld [vmem:[%s4953_s16] ss:$0 sm:$0xff] }
 0x6a9   :  { %v1101_v23 = vpop.permute.xlu1 %1100 }
 0x6aa   :  { %v1099_v26 = vpop.permute.xlu0 %1098  ;;  %v1110_v29 = vsel %vm1108_vm4, %v1107_v27, %v1101_v23 }
 0x6ab   :  { %v1109_v28 = vsel %vm1108_vm4, %v1106_v25, %v1099_v26 }
 0x6ac   :  { %3708 = vmatprep.mubr.msk.f32.mxu0 %vm128_vm0, %v1109_v28 }
 0x6ad   :  { %3709 = vmatmul.mubr.msk.f32.vlgmr.msra.gmra.mrb[8].mxu0 %vm128_vm0, %v1110_v29 }
 0x6ae   :  { %3963 = vmatpush3.bf16.msra.mxu0 %v3960_v12 }
 0x6af   :  { %3965 = vmatprep.subr.bf16.mxu0 %v3964_v16 }
 0x6b2   :  { %3967 = vmatpush3.bf16.msra.mxu0 %v3964_v16  ;;  %v3408_v16 = vld [vmem:[%s4952_s15] ss:$0 sm:$0xff] }
 0x6b3   :  { %3969 = vmatprep.subr.bf16.mxu0 %v3968_v18 }
 0x6b6   :  { %3971 = vmatpush3.bf16.msra.mxu0 %v3968_v18 }
 0x6b7   :  { %3973 = vmatprep.subr.bf16.mxu0 %v3972_v21 }
 0x6ba   :  { %3975 = vmatpush3.bf16.msra.mxu0 %v3972_v21 }
 0x780   :  { %v3710_v48 = vpop.f32.mrb[8].mxu0 }
 0x781   :  { %v1200_v30 = vadd.f32 %v3710_v48, %v3397_v44  ;;  %v1194_v41 = vpop.f32.mrb[9].mxu0 }
 0x782   :  { %v1195_v31 = vadd.f32 %v3397_v44, %v1194_v41 }
 0x783   :  { %v1204_v55 = vadd.f32 %v1200_v30, %v4536_v35 }
 0x784   :  { %v1203_v32 = vadd.f32 %v1195_v31, %v4532_v33 }
 0x785   :  { %v1210_v34 = vsel %vm128_vm0, %v1204_v55, 0.0 }
 0x786   :  { %1211 = vadd.xlane.f32.xlu1 %v1210_v34  ;;  %v1207_v36 = vsel %vm128_vm0, %v1203_v32, 0.0 }
 0x787   :  { %1208 = vadd.xlane.f32.xlu0 %v1207_v36 }
 0x813   :  { %v1212_v37 = vpop.xlane.xlu1 %1211 }
 0x814   :  { %v1214_v38 = vmul.f32 0.03125, %v1212_v37  ;;  %v1209_v39 = vpop.xlane.xlu0 %1208 }
 0x815   :  { %v1213_v40 = vmul.f32 0.03125, %v1209_v39 }
 0x816   :  { %v1216_v42 = vsub.f32 %v1204_v55, %v1214_v38 }
 0x817   :  { %v1215_v43 = vsub.f32 %v1203_v32, %v1213_v40 }
 0x818   :  { %v1218_v33 = vmul.f32 %v1216_v42, %v1216_v42 }
 0x819   :  { %v1217_v45 = vmul.f32 %v1215_v43, %v1215_v43 }
 0x81a   :  { %v1222_v46 = vsel %vm128_vm0, %v1218_v33, 0.0 }
 0x81b   :  { %v1219_v35 = vsel %vm128_vm0, %v1217_v45, 0.0  ;;  %v3405_v45 = vld [vmem:[%s4448_s20] ss:$0 sm:$0xff] }
 0x81c   :  { %1220 = vadd.xlane.f32.xlu0 %v1219_v35 }
 0x820   :  { %1223 = vadd.xlane.f32.xlu0 %v1222_v46 }
 0x8a9   :  { %v1221_v57 = vpop.xlane.xlu0 %1220 }
 0x8aa   :  { %v1225_v58 = vmul.f32 0.03125, %v1221_v57 }
 0x8ac   :  { %v1227_v59 = vadd.f32 1e-12, %v1225_v58 }
 0x8ad   :  { %v1224_v60 = vpop.xlane.xlu0 %1223 }
 0x8ae   :  { %4243 = vrsqrt.f32 %v1227_v59  ;;  %v1226_v61 = vmul.f32 0.03125, %v1224_v60 }
 0x8b0   :  { %v1228_v62 = vadd.f32 1e-12, %v1226_v61 }
 0x8b2   :  { %4245 = vrsqrt.f32 %v1228_v62 }
 0x8b8   :  { %v4244_v49 = vpop.eup %4243 }
 0x8b9   :  { %v1231_v0 = vmul.f32 %v4244_v49, %v1215_v43 }
 0x8bb   :  { %v1239_v2 = vmul.f32 %v3400_v63, %v1231_v0 }
 0x8bc   :  { %v4246_v3 = vpop.eup %4245 }
 0x8bd   :  { %v1232_v4 = vmul.f32 %v4246_v3, %v1216_v42  ;;  %v1247_v6 = vadd.f32 %v3401_v1, %v1239_v2  ;;  %v3411_v2 = vld [vmem:[%s4403_s29 + $0x28] sm:$0xff] }
 0x8bf   :  { %v1240_v7 = vmul.f32 %v3400_v63, %v1232_v4  ;;  %3719 = vmatprep.mubr.msk.f32.mxu1 %vm128_vm0, %v1247_v6  ;;  %v3412_v4 = vld [vmem:[%s4403_s29 + $0x30] sm:$0xff] }
 0x8c1   :  { %v1248_v9 = vadd.f32 %v3401_v1, %v1240_v7  ;;  %v3410_v1 = vld [vmem:[%s4403_s29 + $0x20] sm:$0xff] }
 0x8c2   :  { %v3976_v3 = vpack.c.bf16 %v3411_v2, %v3410_v1 }
 0x8c3   :  { %3720 = vmatmul.mubr.msk.f32.vlgmr.msra.gmra.mrb[10].mxu1 %vm128_vm0, %v1248_v9 }
 0x8c4   :  { %3977 = vmatprep.subr.bf16.mxu1 %v3976_v3 }
 0x8c5   :  { %3979 = vmatpush3.bf16.msra.mxu1 %v3976_v3 }
 0x996   :  { %v3721_v23 = vpop.f32.mrb[10].mxu1 }
 0x997   :  { %v1338_v24 = vadd.f32 %v3721_v23, %v3402_v22  ;;  %v1332_v25 = vpop.f32.mrb[11].mxu1 }
 0x998   :  { %v1333_v26 = vadd.f32 %v3402_v22, %v1332_v25  ;;  %v3415_v25 = vld [vmem:[%s4408_s3 + $0x1] ss:$0 sm:$0xff]  ;;  %s4955_s3 = sld [smem:[#allocation6_spill]] }
 0x999   :  { %v1344_v27 = vmul.f32 0.044715, %v1338_v24  ;;  %v1342_v40 = vmul.f32 0.5, %v1338_v24 }
 0x99a   :  { %v1343_v28 = vmul.f32 0.044715, %v1333_v26  ;;  %v1341_v38 = vmul.f32 0.5, %v1333_v26 }
 0x99b   :  { %v1346_v29 = vmul.f32 %v1344_v27, %v1338_v24 }
 0x99c   :  { %v1345_v44 = vmul.f32 %v1343_v28, %v1333_v26 }
 0x99d   :  { %v1348_v48 = vmul.f32 %v1346_v29, %v1338_v24 }
 0x99e   :  { %v1347_v30 = vmul.f32 %v1345_v44, %v1333_v26 }
 0x99f   :  { %v1350_v41 = vadd.f32 %v1348_v48, %v1338_v24 }
 0x9a0   :  { %v1349_v31 = vadd.f32 %v1347_v30, %v1333_v26 }
 0x9a1   :  { %v1352_v55 = vmul.f32 0.7978846, %v1350_v41 }
 0x9a2   :  { %v1351_v32 = vmul.f32 0.7978846, %v1349_v31 }
 0x9a3   :  { %4247 = vtanh.f32 %v1352_v55 }
 0x9a4   :  { %4249 = vtanh.f32 %v1351_v32 }
 0x9ad   :  { %v4248_v34 = vpop.eup %4247 }
 0x9ae   :  { %v4250_v36 = vpop.eup %4249  ;;  %v1356_v37 = vadd.f32 1.0, %v4248_v34 }
 0x9af   :  { %v1355_v39 = vadd.f32 1.0, %v4250_v36 }
 0x9b0   :  { %v1358_v43 = vmul.f32 %v1356_v37, %v1342_v40 }
 0x9b1   :  { %v1357_v42 = vmul.f32 %v1355_v39, %v1341_v38 }
 0x9b3   :  { %3738 = vmatprep.mubr.msk.f32.mxu0 %vm1374_vm5, %v1357_v42 }
 0x9b4   :  { %3739 = vmatmul.mubr.msk.f32.vlgmr.msra.gmra.mrb[10].mxu0 %vm1374_vm5, %v1358_v43 }
 0xa87   :  { %v3740_v35 = vpop.f32.mrb[10].mxu0 }
 0xa88   :  { %v1453_v33 = vadd.f32 %v3740_v35, %v3405_v45  ;;  %v1447_v46 = vpop.f32.mrb[11].mxu0 }
 0xa89   :  { %v1448_v47 = vadd.f32 %v3405_v45, %v1447_v46 }
 0xa8a   :  { %v1457_v50 = vadd.f32 %v1453_v33, %v1248_v9 }
 0xa8b   :  { %v1456_v51 = vadd.f32 %v1448_v47, %v1247_v6  ;;  %v3413_v6 = vld [vmem:[%s4403_s29 + $0x38] sm:$0xff]  ;;  %s4954_s29 = sld [smem:[#allocation5_spill]] }
 0xa8c   :  { %v1463_v53 = vsel %vm128_vm0, %v1457_v50, 0.0  ;;  %v3980_v7 = vpack.c.bf16 %v3413_v6, %v3412_v4 }
 0xa8d   :  { %1464 = vadd.xlane.f32.xlu1 %v1463_v53  ;;  %v1460_v54 = vsel %vm128_vm0, %v1456_v51, 0.0 }
 0xa8e   :  { %1461 = vadd.xlane.f32.xlu0 %v1460_v54  ;;  %3981 = vmatprep.subr.bf16.mxu1 %v3980_v7 }
 0xa8f   :  { %3983 = vmatpush3.bf16.msra.mxu1 %v3980_v7 }
 0xb1a   :  { %v1465_v56 = vpop.xlane.xlu1 %1464 }
 0xb1b   :  { %v1467_v57 = vmul.f32 0.03125, %v1465_v56  ;;  %v1462_v58 = vpop.xlane.xlu0 %1461 }
 0xb1c   :  { %v1466_v59 = vmul.f32 0.03125, %v1462_v58 }
 0xb1d   :  { %v1469_v60 = vsub.f32 %v1457_v50, %v1467_v57 }
 0xb1e   :  { %v1468_v61 = vsub.f32 %v1456_v51, %v1466_v59 }
 0xb1f   :  { %v1471_v62 = vmul.f32 %v1469_v60, %v1469_v60 }
 0xb20   :  { %v1470_v49 = vmul.f32 %v1468_v61, %v1468_v61 }
 0xb21   :  { %v1475_v63 = vsel %vm128_vm0, %v1471_v62, 0.0 }
 0xb22   :  { %1476 = vadd.xlane.f32.xlu1 %v1475_v63  ;;  %v1472_v0 = vsel %vm128_vm0, %v1470_v49, 0.0 }
 0xb23   :  { %1473 = vadd.xlane.f32.xlu0 %v1472_v0 }
 0xbaf   :  { %v1477_v9 = vpop.xlane.xlu1 %1476 }
 0xbb0   :  { %v1479_v10 = vmul.f32 0.03125, %v1477_v9  ;;  %v1474_v11 = vpop.xlane.xlu0 %1473 }
 0xbb1   :  { %v1478_v12 = vmul.f32 0.03125, %v1474_v11 }
 0xbb2   :  { %v1481_v13 = vadd.f32 1e-12, %v1479_v10 }
 0xbb3   :  { %v1480_v14 = vadd.f32 1e-12, %v1478_v12 }
 0xbb4   :  { %4251 = vrsqrt.f32 %v1481_v13 }
 0xbb5   :  { %4253 = vrsqrt.f32 %v1480_v14 }
 0xbbe   :  { %v4252_v15 = vpop.eup %4251 }
 0xbbf   :  { %v4254_v17 = vpop.eup %4253  ;;  %v1485_v18 = vmul.f32 %v4252_v15, %v1469_v60 }
 0xbc0   :  { %v1484_v19 = vmul.f32 %v4254_v17, %v1468_v61 }
 0xbc1   :  { %v1493_v21 = vmul.f32 %v3408_v16, %v1485_v18 }
 0xbc2   :  { %v1492_v22 = vmul.f32 %v3408_v16, %v1484_v19 }
 0xbc3   :  { %v4720_v24 = vadd.f32 %v3409_v20, %v1493_v21 }
 0xbc4   :  { %v4718_v23 = vadd.f32 %v3409_v20, %v1492_v22 }
 0xbc6   :  { %3749 = vmatprep.mubr.msk.f32.mxu1 %vm128_vm0, %v4718_v23 }
 0xbc7   :  { %3750 = vmatmul.mubr.msk.f32.vlgmr.msra.gmra.mrb[12].mxu1 %vm128_vm0, %v4720_v24 }
 0xc9a   :  { %v3751_v26 = vpop.f32.mrb[12].mxu1 }
 0xc9b   :  { %v1593_v27 = vadd.f32 %v3751_v26, %v3415_v25  ;;  %v1587_v28 = vpop.f32.mrb[13].mxu1 }
 0xc9c   :  { %v1588_v29 = vadd.f32 %v3415_v25, %v1587_v28 }
 0xc9d   :  { %1600 = vrot.lane.b32.xlu1 %v1593_v27, %s4352_s0 }
 0xc9e   :  { %1598 = vrot.lane.b32.xlu0 %v1588_v29, %s4352_s0  ;;  %3756 = vmatprep.mubr.msk.f32.mxu1 %vm282_vm1, %v1588_v29  ;;  %v4732_v44 = vpack.i.bf16 %v1593_v27, %v1588_v29 }
 0xca1   :  { %1604 = vrot.lane.b32.xlu1 %v1593_v27, %s4353_s5 }
 0xca2   :  { %1606 = vrot.lane.b32.xlu0 %v1588_v29, %s4354_s21 }
 0xca5   :  { %1602 = vrot.lane.b32.xlu1 %v1588_v29, %s4353_s5 }
 0xca6   :  { %4166 = vrot.lane.b32.xlu0 %v4732_v44, %s4355_s25 }
 0xca9   :  { %1608 = vrot.lane.b32.xlu1 %v1593_v27, %s4354_s21 }
 0xd0f   :  { %v1601_v48 = vpop.permute.xlu1 %1600 }
 0xd10   :  { %v1599_v30 = vpop.permute.xlu0 %1598 }
 0xd11   :  { %v4738_v41 = vpack.i.bf16 %v1601_v48, %v1599_v30  ;;  %3763 = vmatprep.mubr.msk.f32.mxu0 %vm282_vm1, %v1599_v30 }
 0xd13   :  { %v1605_v31 = vpop.permute.xlu1 %1604  ;;  %4171 = vrot.lane.b32.xlu1 %v4738_v41, %s4355_s25 }
 0xd14   :  { %v1607_v55 = vpop.permute.xlu0 %1606 }
 0xd17   :  { %v1603_v32 = vpop.permute.xlu1 %1602 }
 0xd18   :  { %v4743_v34 = vpack.i.bf16 %v1605_v31, %v1603_v32  ;;  %v4167_v36 = vpop.permute.xlu0 %4166 }
 0xd19   :  { %v4169_v37 = vunpack.i.h.bf16 %v4167_v36  ;;  %v4168_v38 = vunpack.i.l.bf16 %v4167_v36 }
 0xd1a   :  { %4176 = vrot.lane.b32.xlu0 %v4743_v34, %s4355_s25 }
 0xd1b   :  { %v3984_v39 = vpack.c.bf16 %v4169_v37, %v4168_v38  ;;  %v1609_v40 = vpop.permute.xlu1 %1608 }
 0xd1c   :  { %v4747_v42 = vpack.i.bf16 %v1609_v40, %v1607_v55 }
 0xd1d   :  { %3986 = vmatprep.subr.msk.bf16.mxu1 %vm4563_vm2, %v3984_v39 }
 0xd1e   :  { %4181 = vrot.lane.b32.xlu1 %v4747_v42, %s4355_s25  ;;  %3989 = vmatpush3.bf16.xpose.msk.msra.mxu1 %vm4563_vm2, %v3984_v39 }
 0xd25   :  { %3757 = vmatmul.mubr.msk.f32.vlgmr.msra.gmra.mrb[14].mxu1 %vm282_vm1, %v1593_v27 }
 0xd26   :  { %3770 = vmatprep.mubr.msk.f32.mxu1 %vm282_vm1, %v1603_v32 }
 0xd85   :  { %v4172_v43 = vpop.permute.xlu1 %4171 }
 0xd86   :  { %v4174_v45 = vunpack.i.h.bf16 %v4172_v43  ;;  %v4173_v35 = vunpack.i.l.bf16 %v4172_v43 }
 0xd88   :  { %v3990_v33 = vpack.c.bf16 %v4174_v45, %v4173_v35 }
 0xd8a   :  { %3992 = vmatprep.subr.msk.bf16.mxu0 %vm4563_vm2, %v3990_v33 }
 0xd8b   :  { %3995 = vmatpush3.bf16.xpose.msk.msra.mxu0 %vm4563_vm2, %v3990_v33 }
 0xd8c   :  { %v4177_v46 = vpop.permute.xlu0 %4176 }
 0xd8d   :  { %v4179_v47 = vunpack.i.h.bf16 %v4177_v46  ;;  %v4178_v50 = vunpack.i.l.bf16 %v4177_v46 }
 0xd8f   :  { %v3996_v51 = vpack.c.bf16 %v4179_v47, %v4178_v50 }
 0xd90   :  { %v4182_v53 = vpop.permute.xlu1 %4181 }
 0xd91   :  { %v4184_v54 = vunpack.i.h.bf16 %v4182_v53  ;;  %v4183_v56 = vunpack.i.l.bf16 %v4182_v53  ;;  %3998 = vmatprep.subr.msk.bf16.mxu1 %vm4563_vm2, %v3996_v51 }
 0xd92   :  { %3764 = vmatmul.mubr.msk.f32.vlgmr.msra.gmra.mrb[12].mxu0 %vm282_vm1, %v1601_v48  ;;  %4001 = vmatpush3.bf16.xpose.msk.msra.mxu1 %vm4563_vm2, %v3996_v51 }
 0xd93   :  { %v4002_v57 = vpack.c.bf16 %v4184_v54, %v4183_v56  ;;  %3777 = vmatprep.mubr.msk.f32.mxu0 %vm282_vm1, %v1607_v55 }
 0xd95   :  { %4004 = vmatprep.subr.msk.bf16.mxu0 %vm4563_vm2, %v4002_v57 }
 0xd96   :  { %4007 = vmatpush3.bf16.xpose.msk.msra.mxu0 %vm4563_vm2, %v4002_v57 }
 0xd99   :  { %3771 = vmatmul.mubr.msk.f32.vlgmr.msra.gmra.mrb[16].mxu1 %vm282_vm1, %v1605_v31 }
 0xd9d   :  { %3778 = vmatmul.mubr.msk.f32.vlgmr.msra.gmra.mrb[14].mxu0 %vm282_vm1, %v1609_v40 }
 0xdf8   :  { %v3758_v58 = vpop.f32.mrb[14].mxu1 }
 0xdf9   :  { %v1959_v59 = vmul.f32 0.35355338, %v3758_v58  ;;  %v1688_v60 = vpop.f32.mrb[15].mxu1 }
 0xdfa   :  { %v1958_v61 = vmul.f32 0.35355338, %v1688_v60 }
 0xdfb   :  { %v1967_v62 = vadd.f32 %v1959_v59, %v4594_v5 }
 0xdfc   :  { %v1966_v49 = vadd.f32 %v1958_v61, %v4597_v8 }
 0xdfd   :  { %v1977_v63 = vsel %vm643_vm3, %v1967_v62, -inf }
 0xdfe   :  { %1978 = vmax.xlane.f32.xlu1 %v1977_v63  ;;  %v1974_v0 = vsel %vm643_vm3, %v1966_v49, -inf }
 0xdff   :  { %1975 = vmax.xlane.f32.xlu0 %v1974_v0 }
 0xe65   :  { %v3765_v52 = vpop.f32.mrb[12].mxu0 }
 0xe66   :  { %v1961_v1 = vmul.f32 0.35355338, %v3765_v52  ;;  %v1775_v2 = vpop.f32.mrb[13].mxu0 }
 0xe67   :  { %v1960_v3 = vmul.f32 0.35355338, %v1775_v2 }
 0xe68   :  { %v1969_v4 = vadd.f32 %v1961_v1, %v4594_v5 }
 0xe69   :  { %v1968_v7 = vadd.f32 %v1960_v3, %v4597_v8 }
 0xe6a   :  { %v1983_v6 = vsel %vm643_vm3, %v1969_v4, -inf }
 0xe6b   :  { %1984 = vmax.xlane.f32.xlu0 %v1983_v6  ;;  %v1980_v13 = vsel %vm643_vm3, %v1968_v7, -inf }
 0xe6c   :  { %v3772_v9 = vpop.f32.mrb[16].mxu1 }
 0xe6d   :  { %v1963_v10 = vmul.f32 0.35355338, %v3772_v9  ;;  %v1862_v11 = vpop.f32.mrb[17].mxu1 }
 0xe6e   :  { %v1962_v12 = vmul.f32 0.35355338, %v1862_v11 }
 0xe6f   :  { %1981 = vmax.xlane.f32.xlu0 %v1980_v13  ;;  %v1971_v14 = vadd.f32 %v1963_v10, %v4594_v5 }
 0xe70   :  { %v3779_v15 = vpop.f32.mrb[14].mxu0  ;;  %v1970_v16 = vadd.f32 %v1962_v12, %v4597_v8 }
 0xe71   :  { %v1965_v17 = vmul.f32 0.35355338, %v3779_v15  ;;  %v1949_v18 = vpop.f32.mrb[15].mxu0  ;;  %v1989_v19 = vsel %vm643_vm3, %v1971_v14, -inf }
 0xe72   :  { %v1964_v20 = vmul.f32 0.35355338, %v1949_v18  ;;  %1990 = vmax.xlane.f32.xlu1 %v1989_v19  ;;  %v1986_v21 = vsel %vm643_vm3, %v1970_v16, -inf }
 0xe73   :  { %1987 = vmax.xlane.f32.xlu0 %v1986_v21  ;;  %v1973_v22 = vadd.f32 %v1965_v17, %v4594_v5 }
 0xe74   :  { %v1972_v25 = vadd.f32 %v1964_v20, %v4597_v8 }
 0xe75   :  { %v1995_v26 = vsel %vm643_vm3, %v1973_v22, -inf }
 0xe76   :  { %1996 = vmax.xlane.f32.xlu1 %v1995_v26  ;;  %v1992_v27 = vsel %vm643_vm3, %v1972_v25, -inf }
 0xe77   :  { %1993 = vmax.xlane.f32.xlu0 %v1992_v27 }
 0xe8b   :  { %v1979_v28 = vpop.xlane.xlu1 %1978 }
 0xe8c   :  { %v1999_v29 = vsub.f32 %v1967_v62, %v1979_v28  ;;  %v1976_v48 = vpop.xlane.xlu0 %1975 }
 0xe8d   :  { %v1998_v30 = vsub.f32 %v1966_v49, %v1976_v48 }
 0xe8e   :  { %v2008_v31 = vmul.f32 1.442695, %v1999_v29 }
 0xe8f   :  { %v2006_v55 = vmul.f32 1.442695, %v1998_v30 }
 0xe90   :  { %4255 = vpow2.f32 %v2008_v31 }
 0xe91   :  { %4257 = vpow2.f32 %v2006_v55 }
 0xe9a   :  { %v4789_v32 = vpop.eup %4255 }
 0xe9b   :  { %v4258_v36 = vpop.eup %4257  ;;  %v2025_v5 = vsel %vm643_vm3, %v4789_v32, 0.0 }
 0xe9c   :  { %2026 = vadd.xlane.f32.xlu1 %v2025_v5  ;;  %v2022_v8 = vsel %vm643_vm3, %v4258_v36, 0.0 }
 0xe9d   :  { %2023 = vadd.xlane.f32.xlu0 %v2022_v8 }
 0xef8   :  { %v1985_v37 = vpop.xlane.xlu0 %1984 }
 0xef9   :  { %v2001_v38 = vsub.f32 %v1969_v4, %v1985_v37 }
 0xefb   :  { %v2012_v39 = vmul.f32 1.442695, %v2001_v38 }
 0xefc   :  { %v1982_v40 = vpop.xlane.xlu0 %1981 }
 0xefd   :  { %4259 = vpow2.f32 %v2012_v39  ;;  %v2000_v43 = vsub.f32 %v1968_v7, %v1982_v40 }
 0xeff   :  { %v2010_v45 = vmul.f32 1.442695, %v2000_v43  ;;  %v1991_v35 = vpop.xlane.xlu1 %1990 }
 0xf00   :  { %v2003_v33 = vsub.f32 %v1971_v14, %v1991_v35  ;;  %v1988_v46 = vpop.xlane.xlu0 %1987 }
 0xf01   :  { %4261 = vpow2.f32 %v2010_v45  ;;  %v2002_v47 = vsub.f32 %v1970_v16, %v1988_v46  ;;  %v3442_v46 = vld [vmem:[%s4413_s8 + $0x20] sm:$0xff] }
 0xf02   :  { %v2016_v50 = vmul.f32 1.442695, %v2003_v33 }
 0xf03   :  { %v2014_v51 = vmul.f32 1.442695, %v2002_v47  ;;  %v1997_v53 = vpop.xlane.xlu1 %1996  ;;  %v3443_v47 = vld [vmem:[%s4413_s8 + $0x28] sm:$0xff] }
 0xf04   :  { %4263 = vpow2.f32 %v2016_v50  ;;  %v2005_v54 = vsub.f32 %v1973_v22, %v1997_v53  ;;  %v1994_v56 = vpop.xlane.xlu0 %1993  ;;  %v4024_v50 = vpack.c.bf16 %v3443_v47, %v3442_v46  ;;  %v3445_v53 = vld [vmem:[%s4413_s8 + $0x38] sm:$0xff] }
 0xf05   :  { %4265 = vpow2.f32 %v2014_v51  ;;  %v2004_v57 = vsub.f32 %v1972_v25, %v1994_v56  ;;  %v3444_v51 = vld [vmem:[%s4413_s8 + $0x30] sm:$0xff]  ;;  %s4956_s8 = sld [smem:[#allocation9_spill]] }
 0xf06   :  { %v2020_v58 = vmul.f32 1.442695, %v2005_v54  ;;  %v4028_v54 = vpack.c.bf16 %v3445_v53, %v3444_v51  ;;  %v3462_v51 = vld [vmem:[%s4443_s12 + $0x40] sm:$0xff]  ;;  %v3463_v53 = vld [vmem:[%s4443_s12 + $0x48] sm:$0xff] }
 0xf07   :  { %v4794_v59 = vpop.eup %4259  ;;  %v2018_v60 = vmul.f32 1.442695, %v2004_v57 }
 0xf08   :  { %4267 = vpow2.f32 %v2020_v58  ;;  %v2031_v61 = vsel %vm643_vm3, %v4794_v59, 0.0 }
 0xf09   :  { %4269 = vpow2.f32 %v2018_v60  ;;  %2032 = vadd.xlane.f32.xlu1 %v2031_v61 }
 0xf0b   :  { %v4798_v62 = vpop.eup %4261 }
 0xf0c   :  { %v2028_v49 = vsel %vm643_vm3, %v4798_v62, 0.0 }
 0xf0d   :  { %2029 = vadd.xlane.f32.xlu0 %v2028_v49 }
 0xf0e   :  { %v4802_v63 = vpop.eup %4263 }
 0xf0f   :  { %v4266_v0 = vpop.eup %4265  ;;  %v2037_v52 = vsel %vm643_vm3, %v4802_v63, 0.0 }
 0xf10   :  { %2038 = vadd.xlane.f32.xlu1 %v2037_v52  ;;  %v2034_v1 = vsel %vm643_vm3, %v4266_v0, 0.0 }
 0xf11   :  { %2035 = vadd.xlane.f32.xlu0 %v2034_v1 }
 0xf12   :  { %v4807_v2 = vpop.eup %4267 }
 0xf13   :  { %v4809_v3 = vpop.eup %4269  ;;  %v2043_v4 = vsel %vm643_vm3, %v4807_v2, 0.0 }
 0xf14   :  { %2044 = vadd.xlane.f32.xlu1 %v2043_v4  ;;  %v2040_v6 = vsel %vm643_vm3, %v4809_v3, 0.0 }
 0xf15   :  { %2041 = vadd.xlane.f32.xlu0 %v2040_v6 }
 0xf25   :  { %4191 = vrot.lane.b32.xlu1 %v4738_v41, %s4356_s9 }
 0xf29   :  { %4196 = vrot.lane.b32.xlu1 %v4743_v34, %s4356_s9  ;;  %v2027_v11 = vpop.xlane.xlu1 %2026 }
 0xf2a   :  { %v2024_v7 = vpop.xlane.xlu0 %2023 }
 0xf2b   :  { %4271 = vrcp.f32 %v2024_v7  ;;  %4186 = vrot.lane.b32.xlu0 %v4732_v44, %s4356_s9 }
 0xf2d   :  { %4201 = vrot.lane.b32.xlu1 %v4747_v42, %s4356_s9 }
 0xf35   :  { %v4272_v9 = vpop.eup %4271 }
 0xf36   :  { %v2047_v10 = vmul.f32 %v4272_v9, %v4258_v36 }
 0xf38   :  { %3784 = vmatprep.mubr.msk.f32.mxu1 %vm643_vm3, %v2047_v10 }
 0xf96   :  { %v2033_v12 = vpop.xlane.xlu1 %2032 }
 0xf9a   :  { %v2030_v13 = vpop.xlane.xlu0 %2029 }
 0xf9d   :  { %v2039_v14 = vpop.xlane.xlu1 %2038 }
 0xf9e   :  { %v2036_v41 = vpop.xlane.xlu0 %2035 }
 0xf9f   :  { %4273 = vrcp.f32 %v2036_v41 }
 0xfa0   :  { %4275 = vrcp.f32 %v2027_v11 }
 0xfa1   :  { %4277 = vrcp.f32 %v2030_v13  ;;  %v2045_v34 = vpop.xlane.xlu1 %2044 }
 0xfa2   :  { %v2042_v15 = vpop.xlane.xlu0 %2041  ;;  %4279 = vrcp.f32 %v2039_v14 }
 0xfa3   :  { %4281 = vrcp.f32 %v2033_v12  ;;  %v3447_v12 = vld [vmem:[%s4418_s14 + $0x1] ss:$0 sm:$0xff]  ;;  %s4957_s14 = sld [smem:[#allocation11_spill]] }
 0xfa4   :  { %4283 = vrcp.f32 %v2042_v15 }
 0xfa5   :  { %v4192_v44 = vpop.permute.xlu1 %4191  ;;  %4285 = vrcp.f32 %v2045_v34 }
 0xfa6   :  { %v4187_v16 = vpop.permute.xlu0 %4186  ;;  %v4194_v42 = vunpack.i.h.bf16 %v4192_v44  ;;  %v4193_v17 = vunpack.i.l.bf16 %v4192_v44 }
 0xfa7   :  { %v4189_v18 = vunpack.i.h.bf16 %v4187_v16  ;;  %v4188_v19 = vunpack.i.l.bf16 %v4187_v16 }
 0xfa8   :  { %v4012_v48 = vpack.c.bf16 %v4194_v42, %v4193_v17 }
 0xfa9   :  { %v4274_v20 = vpop.eup %4273  ;;  %v4008_v21 = vpack.c.bf16 %v4189_v18, %v4188_v19  ;;  %v4197_v22 = vpop.permute.xlu1 %4196 }
 0xfaa   :  { %v4276_v25 = vpop.eup %4275  ;;  %v4199_v26 = vunpack.i.h.bf16 %v4197_v22  ;;  %v4198_v27 = vunpack.i.l.bf16 %v4197_v22  ;;  %v2055_v28 = vmul.f32 %v4274_v20, %v4266_v0 }
 0xfab   :  { %v4278_v29 = vpop.eup %4277  ;;  %4009 = vmatprep.subr.bf16.mxu1 %v4008_v21  ;;  %v2049_v55 = vmul.f32 %v4276_v25, %v4789_v32 }
 0xfac   :  { %v4016_v30 = vpack.c.bf16 %v4199_v26, %v4198_v27  ;;  %4011 = vmatpush3.bf16.msra.mxu1 %v4008_v21  ;;  %3798 = vmatprep.mubr.msk.f32.mxu0 %vm643_vm3, %v2055_v28  ;;  %v4280_v31 = vpop.eup %4279  ;;  %v2051_v38 = vmul.f32 %v4278_v29, %v4798_v62  ;;  %v3454_v27 = vld [vmem:[%s4433_s30 + $0x20] sm:$0xff]  ;;  %v3455_v28 = vld [vmem:[%s4433_s30 + $0x28] sm:$0xff] }
 0xfad   :  { %v4202_v36 = vpop.permute.xlu1 %4201  ;;  %4013 = vmatprep.subr.bf16.mxu1 %v4012_v48  ;;  %v4282_v5 = vpop.eup %4281  ;;  %v2057_v40 = vmul.f32 %v4280_v31, %v4802_v63  ;;  %v4032_v29 = vpack.c.bf16 %v3455_v28, %v3454_v27 }
 0xfae   :  { %v4204_v8 = vunpack.i.h.bf16 %v4202_v36  ;;  %v4203_v37 = vunpack.i.l.bf16 %v4202_v36  ;;  %4017 = vmatprep.subr.bf16.mxu0 %v4016_v30  ;;  %v4284_v39 = vpop.eup %4283  ;;  %v2053_v32 = vmul.f32 %v4282_v5, %v4794_v59 }
 0xfaf   :  { %3785 = vmatmul.mubr.msk.f32.vlgmr.msra.gmra.mrb[18].mxu1 %vm643_vm3, %v2049_v55  ;;  %4019 = vmatpush3.bf16.msra.mxu0 %v4016_v30  ;;  %v4286_v45 = vpop.eup %4285  ;;  %v2059_v35 = vmul.f32 %v4284_v39, %v4809_v3  ;;  %v3457_v30 = vld [vmem:[%s4433_s30 + $0x38] sm:$0xff] }
 0xfb0   :  { %v4020_v43 = vpack.c.bf16 %v4204_v8, %v4203_v37  ;;  %4015 = vmatpush3.bf16.msra.mxu1 %v4012_v48  ;;  %3791 = vmatprep.mubr.msk.f32.mxu1 %vm643_vm3, %v2051_v38  ;;  %v2061_v33 = vmul.f32 %v4286_v45, %v4807_v2  ;;  %v3456_v48 = vld [vmem:[%s4433_s30 + $0x30] sm:$0xff]  ;;  %s4960_s30 = sld [smem:[#allocation15_spill]] }
 0xfb1   :  { %4025 = vmatprep.subr.bf16.mxu0 %v4024_v50  ;;  %v4036_v31 = vpack.c.bf16 %v3457_v30, %v3456_v48 }
 0xfb2   :  { %3799 = vmatmul.mubr.msk.f32.vlgmr.msra.gmra.mrb[16].mxu0 %vm643_vm3, %v2057_v40  ;;  %4021 = vmatprep.subr.bf16.mxu1 %v4020_v43  ;;  %v3452_v40 = vld [vmem:[%s4423_s19 + $0x1] ss:$0 sm:$0xff]  ;;  %s4958_s19 = sld [smem:[#allocation10_spill]] }
 0xfb3   :  { %3792 = vmatmul.mubr.msk.f32.vlgmr.msra.gmra.mrb[20].mxu1 %vm643_vm3, %v2053_v32  ;;  %4027 = vmatpush3.bf16.msra.mxu0 %v4024_v50  ;;  %v3453_v32 = vld [vmem:[%s4428_s24 + $0x1] ss:$0 sm:$0xff]  ;;  %s4959_s24 = sld [smem:[#allocation13_spill]] }
 0xfb4   :  { %4023 = vmatpush3.bf16.msra.mxu1 %v4020_v43  ;;  %3805 = vmatprep.mubr.msk.f32.mxu1 %vm643_vm3, %v2059_v35 }
 0xfb5   :  { %4029 = vmatprep.subr.bf16.mxu0 %v4028_v54  ;;  %4033 = vmatprep.subr.bf16.mxu1 %v4032_v29 }
 0xfb7   :  { %3806 = vmatmul.mubr.msk.f32.vlgmr.msra.gmra.mrb[22].mxu1 %vm643_vm3, %v2061_v33  ;;  %4031 = vmatpush3.bf16.msra.mxu0 %v4028_v54  ;;  %v4040_v54 = vpack.c.bf16 %v3463_v53, %v3462_v51 }
 0xfb8   :  { %4035 = vmatpush3.bf16.msra.mxu1 %v4032_v29  ;;  %v4360_v29 = vmov 0  }
 0xfb9   :  { %4037 = vmatprep.subr.bf16.mxu1 %v4036_v31  ;;  %4041 = vmatprep.subr.bf16.mxu0 %v4040_v54 }
 0xfba   :  { %4205 = vset.pattern.permute.xlu0 %v4360_v29  ;;  %4206 = vset.pattern.permute.xlu1 %v4360_v29  ;;  %v4363_v29 = vmov 0.0  }
 0xfbc   :  { %4039 = vmatpush3.bf16.msra.mxu1 %v4036_v31 }
0x1082   :  { %v3786_v56 = vpop.f32.mrb[18].mxu1 }
0x1083   :  { %v2140_v57 = vpop.f32.mrb[19].mxu1 }
0x1085   :  { %v3800_v58 = vpop.f32.mrb[16].mxu0 }
0x1086   :  { %v3793_v59 = vpop.f32.mrb[20].mxu1  ;;  %v2314_v60 = vpop.f32.mrb[17].mxu0 }
0x1087   :  { %2414 = vrot.lane.b32.xlu1 %v3793_v59, %s4357_s7  ;;  %v2227_v61 = vpop.f32.mrb[21].mxu1 }
0x1088   :  { %2412 = vrot.lane.b32.xlu0 %v2227_v61, %s4357_s7 }
0x108a   :  { %v3807_v62 = vpop.f32.mrb[22].mxu1 }
0x108b   :  { %2422 = vrot.lane.b32.xlu1 %v3800_v58, %s4358_s10  ;;  %v2401_v49 = vpop.f32.mrb[23].mxu1  ;;  %v3466_v58 = vld [vmem:[%s4443_s12 + $0x60] sm:$0xff] }
0x108c   :  { %2420 = vrot.lane.b32.xlu0 %v2314_v60, %s4358_s10  ;;  %v3467_v60 = vld [vmem:[%s4443_s12 + $0x68] sm:$0xff] }
0x108d   :  { %v4048_v61 = vpack.c.bf16 %v3467_v60, %v3466_v58  ;;  %v3476_v60 = vld [vmem:[%s4952_s15 + $0x1] ss:$0 sm:$0xff] }
0x108f   :  { %2430 = vrot.lane.b32.xlu1 %v3807_v62, %s4359_s11  ;;  %v3468_v62 = vld [vmem:[%s4443_s12 + $0x70] sm:$0xff] }
0x1090   :  { %2428 = vrot.lane.b32.xlu0 %v2401_v49, %s4359_s11  ;;  %v3469_v49 = vld [vmem:[%s4443_s12 + $0x78] sm:$0xff] }
0x10f9   :  { %v2415_v63 = vpop.permute.xlu1 %2414 }
0x10fa   :  { %v2413_v0 = vpop.permute.xlu0 %2412  ;;  %v2435_v4 = vsel %vm282_vm1, %v3786_v56, %v2415_v63  ;;  %v3464_v56 = vld [vmem:[%s4443_s12 + $0x50] sm:$0xff]  ;;  %v4052_v63 = vpack.c.bf16 %v3469_v49, %v3468_v62  ;;  %v3477_v49 = vld [vmem:[%s4953_s16 + $0x1] ss:$0 sm:$0xff] }
0x10fb   :  { %v2434_v2 = vsel %vm282_vm1, %v2140_v57, %v2413_v0  ;;  %v3465_v57 = vld [vmem:[%s4443_s12 + $0x58] sm:$0xff]  ;;  %v3459_v0 = vld [vmem:[%s4438_s6 + $0x1] ss:$0 sm:$0xff]  ;;  %s4961_s6 = sld [smem:[#allocation12_spill]]  ;;  %s4962_s12 = sld [smem:[#allocation14_spill]] }
0x10fc   :  { %v4044_v59 = vpack.c.bf16 %v3465_v57, %v3464_v56 }
0x10fd   :  { %v2423_v52 = vpop.permute.xlu1 %2422 }
0x10fe   :  { %v2421_v1 = vpop.permute.xlu0 %2420  ;;  %v2437_v9 = vsel %vm643_vm3, %v2435_v4, %v2423_v52 }
0x10ff   :  { %v2436_v6 = vsel %vm643_vm3, %v2434_v2, %v2421_v1 }
0x1101   :  { %v2431_v3 = vpop.permute.xlu1 %2430 }
0x1102   :  { %v2429_v7 = vpop.permute.xlu0 %2428  ;;  %v2439_v11 = vsel %vm1108_vm4, %v2437_v9, %v2431_v3 }
0x1103   :  { %v2438_v10 = vsel %vm1108_vm4, %v2436_v6, %v2429_v7 }
0x1104   :  { %3816 = vmatprep.mubr.msk.f32.mxu0 %vm128_vm0, %v2438_v10 }
0x1105   :  { %3817 = vmatmul.mubr.msk.f32.vlgmr.msra.gmra.mrb[18].mxu0 %vm128_vm0, %v2439_v11 }
0x1106   :  { %4043 = vmatpush3.bf16.msra.mxu0 %v4040_v54 }
0x1107   :  { %4045 = vmatprep.subr.bf16.mxu0 %v4044_v59 }
0x110a   :  { %4047 = vmatpush3.bf16.msra.mxu0 %v4044_v59 }
0x110b   :  { %4049 = vmatprep.subr.bf16.mxu0 %v4048_v61 }
0x110e   :  { %4051 = vmatpush3.bf16.msra.mxu0 %v4048_v61 }
0x110f   :  { %4053 = vmatprep.subr.bf16.mxu0 %v4052_v63 }
0x1112   :  { %4055 = vmatpush3.bf16.msra.mxu0 %v4052_v63 }
0x11d8   :  { %v3818_v13 = vpop.f32.mrb[18].mxu0 }
0x11d9   :  { %v2531_v14 = vadd.f32 %v3818_v13, %v3447_v12  ;;  %v2525_v41 = vpop.f32.mrb[19].mxu0 }
0x11da   :  { %v2526_v34 = vadd.f32 %v3447_v12, %v2525_v41 }
0x11db   :  { %v2535_v15 = vadd.f32 %v2531_v14, %v4720_v24 }
0x11dc   :  { %v2534_v44 = vadd.f32 %v2526_v34, %v4718_v23 }
0x11dd   :  { %v2543_v16 = vsel %vm128_vm0, %v2535_v15, 0.0 }
0x11de   :  { %2544 = vadd.xlane.f32.xlu1 %v2543_v16  ;;  %v2540_v42 = vsel %vm128_vm0, %v2534_v44, 0.0 }
0x11df   :  { %2541 = vadd.xlane.f32.xlu0 %v2540_v42 }
0x126b   :  { %v2545_v17 = vpop.xlane.xlu1 %2544 }
0x126c   :  { %v2547_v18 = vmul.f32 0.03125, %v2545_v17  ;;  %v2542_v19 = vpop.xlane.xlu0 %2541 }
0x126d   :  { %v2546_v20 = vmul.f32 0.03125, %v2542_v19 }
0x126e   :  { %v2549_v21 = vsub.f32 %v2535_v15, %v2547_v18 }
0x126f   :  { %v2548_v22 = vsub.f32 %v2534_v44, %v2546_v20  ;;  %v3471_v20 = vld [vmem:[%s4448_s20 + $0x1] ss:$0 sm:$0xff]  ;;  %s4963_s20 = sld [smem:[#allocation16_spill]] }
0x1270   :  { %v2551_v23 = vmul.f32 %v2549_v21, %v2549_v21 }
0x1271   :  { %v2550_v25 = vmul.f32 %v2548_v22, %v2548_v22 }
0x1272   :  { %v2555_v26 = vsel %vm128_vm0, %v2551_v23, 0.0 }
0x1273   :  { %v2552_v24 = vsel %vm128_vm0, %v2550_v25, 0.0 }
0x1274   :  { %2553 = vadd.xlane.f32.xlu0 %v2552_v24 }
0x1278   :  { %2556 = vadd.xlane.f32.xlu0 %v2555_v26 }
0x1301   :  { %v2554_v55 = vpop.xlane.xlu0 %2553 }
0x1302   :  { %v2558_v36 = vmul.f32 0.03125, %v2554_v55 }
0x1304   :  { %v2560_v5 = vadd.f32 1e-12, %v2558_v36 }
0x1305   :  { %v2557_v8 = vpop.xlane.xlu0 %2556 }
0x1306   :  { %4287 = vrsqrt.f32 %v2560_v5  ;;  %v2559_v37 = vmul.f32 0.03125, %v2557_v8 }
0x1308   :  { %v2561_v38 = vadd.f32 1e-12, %v2559_v37 }
0x130a   :  { %4289 = vrsqrt.f32 %v2561_v38 }
0x1310   :  { %v4288_v39 = vpop.eup %4287 }
0x1311   :  { %v2564_v43 = vmul.f32 %v4288_v39, %v2548_v22 }
0x1313   :  { %v2572_v45 = vmul.f32 %v3452_v40, %v2564_v43  ;;  %v3054_v43 = vld [vmem:[%s4955_s3] sm:$0x3] }
0x1314   :  { %v4290_v35 = vpop.eup %4289 }
0x1315   :  { %v2565_v33 = vmul.f32 %v4290_v35, %v2549_v21  ;;  %v2580_v46 = vadd.f32 %v3453_v32, %v2572_v45  ;;  %v2841_v45 = vld [vmem:[%s4956_s8 + $0x8] sm:$0xff]  ;;  %v2842_v35 = vld [vmem:[%s4956_s8 + $0x10] sm:$0xff] }
0x1317   :  { %v2573_v47 = vmul.f32 %v3452_v40, %v2565_v33  ;;  %3827 = vmatprep.mubr.msk.f32.mxu1 %vm128_vm0, %v2580_v46  ;;  %v3026_v40 = vld [vmem:[%s4954_s29] sm:$0xff]  ;;  %v3027_v33 = vld [vmem:[%s4954_s29 + $0x8] sm:$0xff] }
0x1319   :  { %v2581_v50 = vadd.f32 %v3453_v32, %v2573_v47  ;;  %v2840_v32 = vld [vmem:[%s4956_s8] sm:$0xff]  ;;  %v2843_v47 = vld [vmem:[%s4956_s8 + $0x18] sm:$0xff] }
0x131b   :  { %3828 = vmatmul.mubr.msk.f32.vlgmr.msra.gmra.mrb[24].mxu1 %vm128_vm0, %v2581_v50 }
0x13ee   :  { %v3829_v52 = vpop.f32.mrb[24].mxu1 }
0x13ef   :  { %v2673_v1 = vadd.f32 %v3829_v52, %v3459_v0  ;;  %v2667_v2 = vpop.f32.mrb[25].mxu1 }
0x13f0   :  { %v2668_v3 = vadd.f32 %v3459_v0, %v2667_v2 }
0x13f1   :  { %v2679_v4 = vmul.f32 0.044715, %v2673_v1  ;;  %v2677_v17 = vmul.f32 0.5, %v2673_v1 }
0x13f2   :  { %v2678_v6 = vmul.f32 0.044715, %v2668_v3  ;;  %v2676_v16 = vmul.f32 0.5, %v2668_v3 }
0x13f3   :  { %v2681_v7 = vmul.f32 %v2679_v4, %v2673_v1 }
0x13f4   :  { %v2680_v9 = vmul.f32 %v2678_v6, %v2668_v3 }
0x13f5   :  { %v2683_v10 = vmul.f32 %v2681_v7, %v2673_v1 }
0x13f6   :  { %v2682_v11 = vmul.f32 %v2680_v9, %v2668_v3 }
0x13f7   :  { %v2685_v12 = vadd.f32 %v2683_v10, %v2673_v1 }
0x13f8   :  { %v2684_v13 = vadd.f32 %v2682_v11, %v2668_v3 }
0x13f9   :  { %v2687_v14 = vmul.f32 0.7978846, %v2685_v12 }
0x13fa   :  { %v2686_v41 = vmul.f32 0.7978846, %v2684_v13 }
0x13fb   :  { %4291 = vtanh.f32 %v2687_v14 }
0x13fc   :  { %4293 = vtanh.f32 %v2686_v41 }
0x1405   :  { %v4292_v34 = vpop.eup %4291 }
0x1406   :  { %v4294_v15 = vpop.eup %4293  ;;  %v2691_v44 = vadd.f32 1.0, %v4292_v34 }
0x1407   :  { %v2690_v42 = vadd.f32 1.0, %v4294_v15 }
0x1408   :  { %v2693_v19 = vmul.f32 %v2691_v44, %v2677_v17 }
0x1409   :  { %v2692_v18 = vmul.f32 %v2690_v42, %v2676_v16 }
0x140b   :  { %3846 = vmatprep.mubr.msk.f32.mxu0 %vm1374_vm5, %v2692_v18 }
0x140c   :  { %3847 = vmatmul.mubr.msk.f32.vlgmr.msra.gmra.mrb[20].mxu0 %vm1374_vm5, %v2693_v19 }
0x140d   :  { %3886 = vmatprep.mubr.msk.f32.mxu0 %vm4362_vm7, %v4363_v29 }
0x14df   :  { %v3848_v21 = vpop.f32.mrb[20].mxu0 }
0x14e0   :  { %v2789_v22 = vadd.f32 %v3848_v21, %v3471_v20  ;;  %v2783_v25 = vpop.f32.mrb[21].mxu0 }
0x14e1   :  { %v2784_v24 = vadd.f32 %v3471_v20, %v2783_v25 }
0x14e2   :  { %v2793_v23 = vadd.f32 %v2789_v22, %v2581_v50  ;;  %v4060_v50 = vpack.c.bf16 %v2843_v47, %v2842_v35  ;;  %v3154_v35 = vld [vmem:[%s4960_s30 + $0x8] sm:$0xff]  ;;  %v3156_v47 = vld [vmem:[%s4960_s30 + $0x18] sm:$0xff] }
0x14e3   :  { %v2792_v26 = vadd.f32 %v2784_v24, %v2580_v46  ;;  %v4056_v46 = vpack.c.bf16 %v2841_v45, %v2840_v32  ;;  %v3153_v45 = vld [vmem:[%s4960_s30] sm:$0xff] }
0x14e4   :  { %v2801_v27 = vsel %vm128_vm0, %v2793_v23, 0.0 }
0x14e5   :  { %2802 = vadd.xlane.f32.xlu1 %v2801_v27  ;;  %v2798_v28 = vsel %vm128_vm0, %v2792_v26, 0.0  ;;  %4057 = vmatprep.subr.bf16.mxu1 %v4056_v46 }
0x14e6   :  { %2799 = vadd.xlane.f32.xlu0 %v2798_v28  ;;  %4059 = vmatpush3.bf16.msra.mxu1 %v4056_v46  ;;  %v4361_v28 = vmov 0.0|0.0   ;;  %v3155_v46 = vld [vmem:[%s4960_s30 + $0x10] sm:$0xff] }
0x14e7   :  { %4061 = vmatprep.subr.bf16.mxu1 %v4060_v50  ;;  %4074 = vmatprep.subr.bf16.mxu0 %v4361_v28 }
0x14ea   :  { %4063 = vmatpush3.bf16.msra.mxu1 %v4060_v50  ;;  %v4078_v50 = vpack.c.bf16 %v3156_v47, %v3155_v46 }
0x1572   :  { %v2803_v48 = vpop.xlane.xlu1 %2802 }
0x1573   :  { %v2805_v30 = vmul.f32 0.03125, %v2803_v48  ;;  %v2800_v31 = vpop.xlane.xlu0 %2799  ;;  %v3478_v48 = vld [vmem:[%s4958_s19] ss:$0 sm:$0xff] }
0x1574   :  { %v2804_v55 = vmul.f32 0.03125, %v2800_v31 }
0x1575   :  { %v2807_v36 = vsub.f32 %v2793_v23, %v2805_v30  ;;  %v2934_v23 = vld [vmem:[%s4957_s14] sm:$0xff] }
0x1576   :  { %v2806_v5 = vsub.f32 %v2792_v26, %v2804_v55  ;;  %v2935_v26 = vld [vmem:[%s4957_s14 + $0x8] sm:$0xff] }
0x1577   :  { %v2809_v8 = vmul.f32 %v2807_v36, %v2807_v36  ;;  %v4064_v27 = vpack.c.bf16 %v2935_v26, %v2934_v23 }
0x1578   :  { %v2808_v37 = vmul.f32 %v2806_v5, %v2806_v5 }
0x1579   :  { %v2813_v38 = vsel %vm128_vm0, %v2809_v8, 0.0  ;;  %4065 = vmatprep.subr.bf16.mxu1 %v4064_v27 }
0x157a   :  { %2814 = vadd.xlane.f32.xlu1 %v2813_v38  ;;  %v2810_v39 = vsel %vm128_vm0, %v2808_v37, 0.0 }
0x157b   :  { %2811 = vadd.xlane.f32.xlu0 %v2810_v39 }
0x158b   :  { %3030 = vperm.xlu1 %4206, %v3026_v40   ;;  %v3066_v40 = vld [vmem:[%s4959_s24 + $0x10] sm:$0xff] }
0x158f   :  { %3057 = vperm.xlu1 %4206, %v3054_v43   ;;  %v3067_v43 = vld [vmem:[%s4959_s24 + $0x18] sm:$0xff] }
0x1590   :  { %v4072_v32 = vpack.c.bf16 %v3067_v43, %v3066_v40 }
0x1591   :  { %3035 = vperm.xlu0 %4205, %v3027_v33   ;;  %v4075_v33 = vpack.c.bf16 %v3154_v35, %v3153_v45 }
0x1593   :  { %4076 = vmatpush3.bf16.msra.mxu0 %v4075_v33 }
0x1594   :  { %4077 = vmatprep.subr.bf16.mxu0 %v4361_v28 }
0x1597   :  { %4079 = vmatpush3.bf16.msra.mxu0 %v4078_v50 }
0x1607   :  { %v2815_v51 = vpop.xlane.xlu1 %2814 }
0x1608   :  { %v2817_v53 = vmul.f32 0.03125, %v2815_v51  ;;  %v2812_v54 = vpop.xlane.xlu0 %2811  ;;  %v3481_v51 = vld [vmem:[%s4961_s6] ss:$0 sm:$0xff] }
0x1609   :  { %v2816_v56 = vmul.f32 0.03125, %v2812_v54 }
0x160a   :  { %v2819_v57 = vadd.f32 1e-12, %v2817_v53 }
0x160b   :  { %v2818_v58 = vadd.f32 1e-12, %v2816_v56  ;;  %v3031_v3 = vpop.permute.xlu1 %3030 }
0x160c   :  { %4295 = vrsqrt.f32 %v2819_v57 }
0x160d   :  { %4297 = vrsqrt.f32 %v2818_v58  ;;  %v3484_v58 = vld [vmem:[%s4962_s12] ss:$0 sm:$0xff] }
0x160f   :  { %v3058_v15 = vpop.permute.xlu1 %3057 }
0x1610   :  { %v3036_v52 = vpop.permute.xlu0 %3035  ;;  %v3059_v17 = vrot.slane %v3058_v15, 1 }
0x1616   :  { %v4296_v59 = vpop.eup %4295 }
0x1617   :  { %v4298_v61 = vpop.eup %4297  ;;  %v2823_v62 = vmul.f32 %v4296_v59, %v2807_v36  ;;  %v3064_v36 = vld [vmem:[%s4959_s24] sm:$0xff] }
0x1618   :  { %v2822_v63 = vmul.f32 %v4298_v61, %v2806_v5  ;;  %v3065_v5 = vld [vmem:[%s4959_s24 + $0x8] sm:$0xff] }
0x1619   :  { %v2831_v0 = vmul.f32 %v3476_v60, %v2823_v62  ;;  %v4069_v38 = vpack.c.bf16 %v3065_v5, %v3064_v36 }
0x161a   :  { %v2830_v1 = vmul.f32 %v3476_v60, %v2822_v63  ;;  %v3239_v63 = vld [vmem:[%s4503_s17 + $0x8] sm:$0xff] }
0x161b   :  { %v2839_v2 = vadd.f32 %v3477_v49, %v2831_v0 }
0x161c   :  { %v2838_v4 = vadd.f32 %v3477_v49, %v2830_v1  ;;  %v3238_v49 = vld [vmem:[%s4503_s17] sm:$0xff] }
0x161d   :  { %v3039_v6 = vmul.f32 %v3036_v52, %v2839_v2  ;;  %v4081_v0 = vpack.c.bf16 %v3239_v63, %v3238_v49  ;;  %v3486_v52 = vld [vmem:[%s4963_s20] ss:$0 sm:$0xff] }
0x161e   :  { %v3038_v7 = vmul.f32 %v3031_v3, %v2838_v4  ;;  %3857 = vmatprep.mubr.msk.f32.mxu1 %vm128_vm0, %v2838_v4 }
0x161f   :  { %v3047_v9 = vsel %vm128_vm0, %v3039_v6, 0.0  ;;  %3858 = vmatmul.mubr.msk.f32.vlgmr.msra.gmra.mrb[26].mxu1 %vm128_vm0, %v2839_v2  ;;  %v3488_v6 = vld [vmem:[%s4508_s13] ss:$0 sm:$0xff] }
0x1620   :  { %v3048_v10 = vrot.slane %v3047_v9, 4  ;;  %v3040_v11 = vsel %vm128_vm0, %v3038_v7, 0.0  ;;  %4067 = vmatpush3.bf16.msra.mxu1 %v4064_v27 }
0x1621   :  { %v3041_v12 = vrot.slane %v3040_v11, 4  ;;  %4068 = vmatprep.subr.bf16.mxu1 %v4361_v28 }
0x1622   :  { %v3049_v13 = vadd.f32 %v3048_v10, %v3047_v9 }
0x1623   :  { %v3042_v14 = vadd.f32 %v3041_v12, %v3040_v11 }
0x1624   :  { %v3050_v41 = vrot.slane %v3049_v13, 2 }
0x1625   :  { %v3043_v34 = vrot.slane %v3042_v14, 2 }
0x1626   :  { %v3051_v44 = vadd.f32 %v3050_v41, %v3049_v13 }
0x1627   :  { %v3044_v16 = vadd.f32 %v3043_v34, %v3042_v14 }
0x1628   :  { %v3052_v42 = vrot.slane %v3051_v44, 1 }
0x1629   :  { %v3045_v18 = vrot.slane %v3044_v16, 1 }
0x162a   :  { %v3053_v19 = vadd.f32 %v3052_v42, %v3051_v44 }
0x162b   :  { %v3046_v20 = vadd.f32 %v3045_v18, %v3044_v16 }
0x162c   :  { %v3063_v21 = vmul.f32 %v3059_v17, %v3053_v19 }
0x162d   :  { %v3062_v22 = vmul.f32 %v3058_v15, %v3046_v20 }
0x162e   :  { %v3077_v25 = vrot.slane %v3063_v21, 7 }
0x1630   :  { %v3079_v24 = vsel %vm3078_vm6, %v3077_v25, %v3062_v22 }
0x16f2   :  { %v3859_v30 = vpop.f32.mrb[26].mxu1 }
0x16f3   :  { %v2929_v31 = vadd.f32 %v3859_v30, %v3478_v48  ;;  %v2923_v55 = vpop.f32.mrb[27].mxu1 }
0x16f4   :  { %v2924_v8 = vadd.f32 %v3478_v48, %v2923_v55 }
0x16f5   :  { %v2933_v39 = vmax.f32 %v2929_v31, 0.0 }
0x16f6   :  { %v2932_v37 = vmax.f32 %v2924_v8, 0.0 }
0x16f8   :  { %3864 = vmatprep.mubr.msk.f32.mxu1 %vm643_vm3, %v2932_v37 }
0x16f9   :  { %3865 = vmatmul.mubr.msk.f32.vlgmr.msra.gmra.mrb[28].mxu1 %vm643_vm3, %v2933_v39 }
0x16fa   :  { %4070 = vmatpush3.bf16.msra.mxu1 %v4069_v38  ;;  %3875 = vmatprep.mubr.msk.f32.mxu1 %vm4362_vm7, %v4363_v29 }
0x16fb   :  { %4071 = vmatprep.subr.bf16.mxu1 %v4361_v28 }
0x16fe   :  { %4073 = vmatpush3.bf16.msra.mxu1 %v4072_v32 }
0x16ff   :  { %4080 = vmatprep.subr.bf16.mxu1 %v4361_v28 }
0x1701   :  { %3876 = vmatmul.mubr.msk.f32.vlgmr.msra.gmra.mrb[30].mxu1 %vm128_vm0, %v3079_v24 }
0x1702   :  { %3893 = vmatprep.mubr.msk.f32.mxu1 %vm4362_vm7, %v4363_v29  ;;  %4082 = vmatpush3.bf16.msra.mxu1 %v4081_v0 }
0x17cc   :  { %v3866_v53 = vpop.f32.mrb[28].mxu1 }
0x17cd   :  { %v3021_v54 = vadd.f32 %v3866_v53, %v3481_v51  ;;  %v3015_v56 = vpop.f32.mrb[29].mxu1 }
0x17ce   :  { %v3016_v57 = vadd.f32 %v3481_v51, %v3015_v56 }
0x17cf   :  { %3025 = vst [vmem:[%s4513_s27 + $0x8] sm:$0xff] %v3021_v54 }
0x17d0   :  { %3024 = vst [vmem:[%s4513_s27] sm:$0xff] %v3016_v57  ;;  %s4364_s27 = smov [#allocation2]  }
0x17d1   :  { %s3329_s18 = sshll.u32 %s4364_s27, 4  ;;  %s3330_s18 = int_to_ptr.vmem [resolvable:$true] %s3329_s18 }
0x17d2   :  { %s4299_s22 = scalar_lea.vmem %s3330_s18, 32  ;;  %p4304_p1 = scmp.lt.s32.totalorder %s3330_s18, %s3330_s18 }
0x17d3   :  { %p4300_p0 = scmp.ne.s32.totalorder %s3330_s18, %s4299_s22  ;;  %p4305_p2 = scmp.lt.s32.totalorder %s4299_s22, %s4299_s22 }
0x17d4   :  { %v3148_v59 = vpop.f32.mrb[30].mxu1 }
0x17d5   :  { %v3149_v60 = vadd.f32 %v3484_v58, %v3148_v59  ;;  %v3877_v61 = vpop.f32.mrb[31].mxu1  ;;  %p4306_p3 = por %p4305_p2, %p4304_p1 }
0x17d7   :  { %v3152_v62 = vmax.f32 %v3149_v60, 0.0  ;;  %p4307_p4 = pnand %p4306_p3, %p4300_p0 }
0x17d9   :  { %3887 = vmatmul.mubr.msk.f32.vlgmr.msra.gmra.mrb[22].mxu0 %vm128_vm0, %v3152_v62 }
0x18ac   :  { %v3233_v1 = vpop.f32.mrb[22].mxu0 }
0x18ad   :  { %v3234_v2 = vadd.f32 %v3486_v52, %v3233_v1  ;;  %v3888_v3 = vpop.f32.mrb[23].mxu0 }
0x18af   :  { %v3237_v4 = vmax.f32 %v3234_v2, 0.0 }
0x18b1   :  { %3894 = vmatmul.mubr.msk.f32.vlgmr.msra.gmra.mrb[32].mxu1 %vm643_vm3, %v3237_v4 }
0x1984   :  { %v3316_v7 = vpop.f32.mrb[32].mxu1 }
0x1985   :  { %v3317_v9 = vadd.f32 %v3488_v6, %v3316_v7  ;;  %v3895_v10 = vpop.f32.mrb[33].mxu1 }
0x1987   :  { %3320 = vst [vmem:[#allocation2] sm:$0x3] %v3317_v9 }
0x1988   :  { %4310 = shalt.err (!%p4307_p4)
}
0x1989   :  { %s4311_s17 = scalar_lea.hbm %s4518_s4, 32 }
0x198a   :  { %p4312_p5 = scmp.ne.s32.totalorder %s4518_s4, %s4311_s17  ;;  %p4315_p6 = scmp.lt.u32.totalorder %s4311_s17, %s4518_s4 }
0x198c   :  { %p4317_p7 = pnand %p4315_p6, %p4312_p5 }
0x198e   :  { %4320 = shalt.err (!%p4317_p7)
}
0x198f   :  { %3332 = dma.vmem_to_hbm [thread:$0]  %s3330_s18, 32, %s4518_s4, [#allocation3]  }
0x1990   :  { %4321 = dma.done.wait [#allocation3], 32  }
0x1991   :  { %4322 = vsyncadd [#allocation3], 4294967264 }
0x1992   :  { %3338 = vsyncpa [#allocation3], 1 }

</bundles_post_ra>
